<compile_context>
chip_gen: v6e
topology: v6e:2x2x1
jax: 0.10.0
libtpu: 0.0.40
codegen_flags: <defaults>
</compile_context>

<pallas_src>
import jax
import jax.numpy as jnp
import numpy as np
from jax.experimental import pallas as pl
from jax.experimental.pallas import tpu as pltpu


def _make_lstm_stack_kernel(n_layers, seq_len, batch, hid_dim):
    """Build a fused multi-layer LSTM kernel.

    Kernel ref order:
      inputs : x_ref (T*B, E); per layer: w_ih_ref (in_dim, 4H), w_hh_ref (H, 4H), b_ref (1, 4H)
      outputs: h_out_ref (n_layers, B, H), c_out_ref (n_layers, B, H)
      scratch: gx_sc (T*B, 4H)  -- hoisted x-projections (+bias) for the current layer
               act_sc (T*B, H)  -- inter-layer activations, reused in place across layers
    """
    T, B, H = seq_len, batch, hid_dim

    def kernel(*refs):
        x_ref = refs[0]
        layer_refs = refs[1:1 + 3 * n_layers]
        h_out_ref = refs[1 + 3 * n_layers]
        c_out_ref = refs[2 + 3 * n_layers]
        gx_sc = refs[3 + 3 * n_layers]
        act_sc = refs[4 + 3 * n_layers]

        def run_layer(in_ref, out_ref, w_ih_ref, w_hh_ref, b_ref, li):
            # ---- Hoisted input projection: off the serial h->h critical path. ----
            # One batched (T*B, in_dim) @ (in_dim, 4H) matmul; bias folded in once.
            # NOTE: this full read of in_ref happens BEFORE any write to out_ref below,
            # which makes the in-place reuse of act_sc across layers safe.
            gx_sc[...] = (
                jnp.dot(in_ref[...], w_ih_ref[...],
                        preferred_element_type=jnp.float32)
                + b_ref[...]
            )

            h = jnp.zeros((B, H), jnp.float32)
            c = jnp.zeros((B, H), jnp.float32)

            # Static time loop (T small): every slice below is static.
            for t in range(T):
                row = t * B
                # Recurrent part only: h @ w_hh (read straight from the VMEM ref).
                gates = gx_sc[row:row + B, :] + jnp.dot(
                    h, w_hh_ref[...], preferred_element_type=jnp.float32)
                # Two full-width (B, 4H) EUP passes instead of four narrow ones.
                sig = jax.nn.sigmoid(gates)
                tnh = jnp.tanh(gates)
                # PyTorch LSTM gate order along the 4H (lane) axis: i, f, g, o.
                i_g = sig[:, 0:H]
                f_g = sig[:, H:2 * H]
                g_g = tnh[:, 2 * H:3 * H]
                o_g = sig[:, 3 * H:4 * H]
                c = f_g * c + i_g * g_g
                h = o_g * jnp.tanh(c)
                if out_ref is not None:                      # feed next layer (VMEM only)
                    out_ref[row:row + B, :] = h

            # Only the final per-layer states ever reach the HBM outputs.
            h_out_ref[li] = h
            c_out_ref[li] = c

        in_ref = x_ref
        for li in range(n_layers):
            w_ih_ref = layer_refs[3 * li]
            w_hh_ref = layer_refs[3 * li + 1]
            b_ref = layer_refs[3 * li + 2]
            out_ref = act_sc if li < n_layers - 1 else None
            run_layer(in_ref, out_ref, w_ih_ref, w_hh_ref, b_ref, li)
            in_ref = act_sc

    return kernel


def lstm_stack(embedded, layer_params):
    """embedded: (T, B, E) float32; layer_params: list of {'w_ih','w_hh','b'} in kernel layout.

    Returns (hidden, cell), each (n_layers, B, H) -- nn.LSTM's final states.
    """
    T, B, E = embedded.shape
    n_layers = len(layer_params)
    H = layer_params[0]["w_hh"].shape[0]

    x2d = embedded.astype(jnp.float32).reshape(T * B, E)      # layout plumbing in XLA, free

    in_specs = [pl.BlockSpec((T * B, E), lambda i: (0, 0))]
    weight_args = []
    for lp in layer_params:
        in_dim = lp["w_ih"].shape[0]
        in_specs.append(pl.BlockSpec((in_dim, 4 * H), lambda i: (0, 0)))
        in_specs.append(pl.BlockSpec((H, 4 * H), lambda i: (0, 0)))
        in_specs.append(pl.BlockSpec((1, 4 * H), lambda i: (0, 0)))
        weight_args.extend([lp["w_ih"], lp["w_hh"], lp["b"]])

    grid_spec = pltpu.PrefetchScalarGridSpec(
        num_scalar_prefetch=0,
        grid=(1,),                                   # whole recurrence in one grid step
        in_specs=in_specs,
        out_specs=[
            pl.BlockSpec((n_layers, B, H), lambda i: (0, 0, 0)),
            pl.BlockSpec((n_layers, B, H), lambda i: (0, 0, 0)),
        ],
        scratch_shapes=[
            pltpu.VMEM((T * B, 4 * H), jnp.float32),   # hoisted x-projections
            pltpu.VMEM((T * B, H), jnp.float32),       # inter-layer activations
        ],
    )

    kernel = _make_lstm_stack_kernel(n_layers, T, B, H)
    hidden, cell = pl.pallas_call(
        kernel,
        grid_spec=grid_spec,
        out_shape=(
            jax.ShapeDtypeStruct((n_layers, B, H), jnp.float32),
            jax.ShapeDtypeStruct((n_layers, B, H), jnp.float32),
        ),
        compiler_params=pltpu.CompilerParams(
            dimension_semantics=("arbitrary",),
            vmem_limit_bytes=32 * 1024 * 1024,
        ),
    )(x2d, *weight_args)
    return hidden, cell


def make_encoder_params(key, input_dim, emb_dim, hid_dim, n_layers):
    """Raw parameters mirroring nn.Embedding + nn.LSTM shapes (PyTorch layout)."""
    params = {}
    k_emb, key = jax.random.split(key)
    params["embedding"] = jax.random.normal(
        k_emb, (input_dim, emb_dim), dtype=jnp.float32) * 0.1

    params["lstm"] = []
    for layer in range(n_layers):
        in_dim = emb_dim if layer == 0 else hid_dim
        k1, k2, k3, k4, key = jax.random.split(key, 5)
        stdv = 1.0 / np.sqrt(hid_dim)
        params["lstm"].append({
            "w_ih": jax.random.uniform(k1, (4 * hid_dim, in_dim),
                                       minval=-stdv, maxval=stdv, dtype=jnp.float32),
            "w_hh": jax.random.uniform(k2, (4 * hid_dim, hid_dim),
                                       minval=-stdv, maxval=stdv, dtype=jnp.float32),
            "b_ih": jax.random.uniform(k3, (4 * hid_dim,),
                                       minval=-stdv, maxval=stdv, dtype=jnp.float32),
            "b_hh": jax.random.uniform(k4, (4 * hid_dim,),
                                       minval=-stdv, maxval=stdv, dtype=jnp.float32),
        })
    return params


def prepare_params(raw):
    """One-time transform to kernel layout (hoisted out of the forward path)."""
    prepared = {"embedding": raw["embedding"].astype(jnp.float32), "layers": []}
    for lp in raw["lstm"]:
        prepared["layers"].append({
            "w_ih": jnp.transpose(lp["w_ih"]).astype(jnp.float32),   # (in_dim, 4H)
            "w_hh": jnp.transpose(lp["w_hh"]).astype(jnp.float32),   # (H, 4H)
            "b": (lp["b_ih"] + lp["b_hh"]).astype(jnp.float32).reshape(1, -1),  # (1, 4H)
        })
    return prepared


def encoder_forward(prepared, src):
    """src: (T, B) int32 token ids. Returns (hidden, cell), each (n_layers, B, H)."""
    embedded = jnp.take(prepared["embedding"], src, axis=0)     # (T, B, E) glue gather
    # Dropout = identity (inference mode).
    return lstm_stack(embedded, prepared["layers"])


def _reference_forward(raw_params, src):
    """Pure-JAX reference (lax.scan LSTM) for correctness checking."""
    embedded = jnp.take(raw_params["embedding"], src, axis=0)
    x = embedded
    hs, cs = [], []
    for layer_p in raw_params["lstm"]:
        H = layer_p["w_hh"].shape[1]
        B = x.shape[1]
        w_ih, w_hh = layer_p["w_ih"], layer_p["w_hh"]
        b = layer_p["b_ih"] + layer_p["b_hh"]

        def step(carry, x_t):
            h, c = carry
            gates = x_t @ w_ih.T + h @ w_hh.T + b
            i = jax.nn.sigmoid(gates[:, 0:H])
            f = jax.nn.sigmoid(gates[:, H:2 * H])
            g = jnp.tanh(gates[:, 2 * H:3 * H])
            o = jax.nn.sigmoid(gates[:, 3 * H:4 * H])
            c_new = f * c + i * g
            h_new = o * jnp.tanh(c_new)
            return (h_new, c_new), h_new

        init = (jnp.zeros((B, H), jnp.float32), jnp.zeros((B, H), jnp.float32))
        (h_T, c_T), outs = jax.lax.scan(step, init, x)
        x = outs
        hs.append(h_T)
        cs.append(c_T)
    return jnp.stack(hs, 0), jnp.stack(cs, 0)


if __name__ == "__main__":
    # Small shapes consistent with the module: vocab=50, emb=32, hid=32, layers=2.
    INPUT_DIM, EMB_DIM, HID_DIM, N_LAYERS = 50, 32, 32, 2
    T, B = 8, 2

    key = jax.random.PRNGKey(0)
    k_params, k_src = jax.random.split(key)
    raw_params = make_encoder_params(k_params, INPUT_DIM, EMB_DIM, HID_DIM, N_LAYERS)
    prepared = prepare_params(raw_params)   # weight transpose + bias combine: done once
    src = jax.random.randint(k_src, (T, B), 0, INPUT_DIM, dtype=jnp.int32)

    hidden, cell = encoder_forward(prepared, src)
    hidden = jax.block_until_ready(hidden)
    cell = jax.block_until_ready(cell)

    # Correctness check against pure-JAX reference.
    h_ref, c_ref = _reference_forward(raw_params, src)
    np.testing.assert_allclose(np.asarray(hidden), np.asarray(h_ref), atol=1e-5, rtol=1e-5)
    np.testing.assert_allclose(np.asarray(cell), np.asarray(c_ref), atol=1e-5, rtol=1e-5)

    assert hidden.shape == (N_LAYERS, B, HID_DIM)
    assert cell.shape == (N_LAYERS, B, HID_DIM)
    print("KERNEL_OK")
</pallas_src>

<mosaic_0001>
module attributes {stable_mosaic.version = 11 : i64} {
  func.func @kernel(%arg0: i32, %arg1: memref<16x32xf32, #tpu.memory_space<vmem>>, %arg2: memref<32x128xf32, #tpu.memory_space<vmem>>, %arg3: memref<32x128xf32, #tpu.memory_space<vmem>>, %arg4: memref<1x128xf32, #tpu.memory_space<vmem>>, %arg5: memref<32x128xf32, #tpu.memory_space<vmem>>, %arg6: memref<32x128xf32, #tpu.memory_space<vmem>>, %arg7: memref<1x128xf32, #tpu.memory_space<vmem>>, %arg8: memref<2x2x32xf32, #tpu.memory_space<vmem>>, %arg9: memref<2x2x32xf32, #tpu.memory_space<vmem>>, %arg10: memref<16x128xf32, #tpu.memory_space<vmem>>, %arg11: memref<16x32xf32, #tpu.memory_space<vmem>>) attributes {dimension_semantics = [#tpu.dimension_semantics<arbitrary>], iteration_bounds = array<i64: 1>, scalar_prefetch = 0 : i64, scratch_operands = 2 : i64, tpu.core_type = #tpu.core_type<tc>, window_params = [{pipeline_mode = #tpu.pipeline_mode<synchronous>, transform_indices = @transform_0, window_bounds = array<i64: 16, 32>}, {pipeline_mode = #tpu.pipeline_mode<synchronous>, transform_indices = @transform_1, window_bounds = array<i64: 32, 128>}, {pipeline_mode = #tpu.pipeline_mode<synchronous>, transform_indices = @transform_2, window_bounds = array<i64: 32, 128>}, {pipeline_mode = #tpu.pipeline_mode<synchronous>, transform_indices = @transform_3, window_bounds = array<i64: 1, 128>}, {pipeline_mode = #tpu.pipeline_mode<synchronous>, transform_indices = @transform_4, window_bounds = array<i64: 32, 128>}, {pipeline_mode = #tpu.pipeline_mode<synchronous>, transform_indices = @transform_5, window_bounds = array<i64: 32, 128>}, {pipeline_mode = #tpu.pipeline_mode<synchronous>, transform_indices = @transform_6, window_bounds = array<i64: 1, 128>}, {pipeline_mode = #tpu.pipeline_mode<synchronous>, transform_indices = @transform_7, window_bounds = array<i64: 2, 2, 32>}, {pipeline_mode = #tpu.pipeline_mode<synchronous>, transform_indices = @transform_8, window_bounds = array<i64: 2, 2, 32>}]} {
    %c0 = arith.constant 0 : index
    %c0_0 = arith.constant 0 : index
    %0 = vector.load %arg1[%c0, %c0_0] : memref<16x32xf32, #tpu.memory_space<vmem>>, vector<16x32xf32>
    %c0_1 = arith.constant 0 : index
    %c0_2 = arith.constant 0 : index
    %1 = vector.load %arg2[%c0_1, %c0_2] : memref<32x128xf32, #tpu.memory_space<vmem>>, vector<32x128xf32>
    %cst = arith.constant dense<0.000000e+00> : vector<16x128xf32>
    %2 = tpu.matmul %0, %1, %cst {dimension_numbers = #tpu.dot_dimension_numbers<[1], [0], [0], [1], [0, 0, 1, 1], [], []>} : vector<16x32xf32>, vector<32x128xf32>, vector<16x128xf32> -> vector<16x128xf32>
    %c0_3 = arith.constant 0 : index
    %c0_4 = arith.constant 0 : index
    %3 = vector.load %arg4[%c0_3, %c0_4] : memref<1x128xf32, #tpu.memory_space<vmem>>, vector<1x128xf32>
    %4 = vector.broadcast %3 : vector<1x128xf32> to vector<16x128xf32>
    %5 = arith.addf %2, %4 : vector<16x128xf32>
    %c0_5 = arith.constant 0 : index
    %c0_6 = arith.constant 0 : index
    %6 = vector.load %arg10[%c0_5, %c0_6] : memref<16x128xf32, #tpu.memory_space<vmem>>, vector<16x128xf32>
    tpu.vector_store %arg10[%c0_5, %c0_6], %5 {strides = array<i32>} : memref<16x128xf32, #tpu.memory_space<vmem>>, vector<16x128xf32>,
    %cst_7 = arith.constant 0.000000e+00 : f32
    %7 = vector.broadcast %cst_7 : f32 to vector<2x32xf32>
    %cst_8 = arith.constant 0.000000e+00 : f32
    %8 = vector.broadcast %cst_8 : f32 to vector<2x32xf32>
    %c0_9 = arith.constant 0 : index
    %c0_10 = arith.constant 0 : index
    %9 = vector.load %arg10[%c0_9, %c0_10] : memref<16x128xf32, #tpu.memory_space<vmem>>, vector<2x128xf32>
    %c0_11 = arith.constant 0 : index
    %c0_12 = arith.constant 0 : index
    %10 = vector.load %arg3[%c0_11, %c0_12] : memref<32x128xf32, #tpu.memory_space<vmem>>, vector<32x128xf32>
    %cst_13 = arith.constant dense<0.000000e+00> : vector<2x128xf32>
    %11 = tpu.matmul %7, %10, %cst_13 {dimension_numbers = #tpu.dot_dimension_numbers<[1], [0], [0], [1], [0, 0, 1, 1], [], []>} : vector<2x32xf32>, vector<32x128xf32>, vector<2x128xf32> -> vector<2x128xf32>
    %12 = arith.addf %9, %11 : vector<2x128xf32>
    %13 = arith.negf %12 : vector<2x128xf32>
    %14 = math.exp %13 : vector<2x128xf32>
    %cst_14 = arith.constant 1.000000e+00 : f32
    %15 = vector.broadcast %cst_14 : f32 to vector<2x128xf32>
    %16 = arith.addf %15, %14 : vector<2x128xf32>
    %17 = arith.divf %15, %16 : vector<2x128xf32>
    %18 = math.tanh %12 : vector<2x128xf32>
    %19 = vector.extract_strided_slice %17 {offsets = [0, 0], sizes = [2, 32], strides = [1, 1]} : vector<2x128xf32> to vector<2x32xf32>
    %20 = vector.extract_strided_slice %17 {offsets = [0, 32], sizes = [2, 32], strides = [1, 1]} : vector<2x128xf32> to vector<2x32xf32>
    %21 = vector.extract_strided_slice %18 {offsets = [0, 64], sizes = [2, 32], strides = [1, 1]} : vector<2x128xf32> to vector<2x32xf32>
    %22 = vector.extract_strided_slice %17 {offsets = [0, 96], sizes = [2, 32], strides = [1, 1]} : vector<2x128xf32> to vector<2x32xf32>
    %23 = arith.mulf %20, %8 : vector<2x32xf32>
    %24 = arith.mulf %19, %21 : vector<2x32xf32>
    %25 = arith.addf %23, %24 : vector<2x32xf32>
    %26 = math.tanh %25 : vector<2x32xf32>
    %27 = arith.mulf %22, %26 : vector<2x32xf32>
    %c0_15 = arith.constant 0 : index
    %c0_16 = arith.constant 0 : index
    %28 = vector.load %arg11[%c0_15, %c0_16] : memref<16x32xf32, #tpu.memory_space<vmem>>, vector<2x32xf32>
    tpu.vector_store %arg11[%c0_15, %c0_16], %27 {strides = array<i32>} : memref<16x32xf32, #tpu.memory_space<vmem>>, vector<2x32xf32>,
    %c2 = arith.constant 2 : index
    %c0_17 = arith.constant 0 : index
    %29 = vector.load %arg10[%c2, %c0_17] : memref<16x128xf32, #tpu.memory_space<vmem>>, vector<2x128xf32>
    %c0_18 = arith.constant 0 : index
    %c0_19 = arith.constant 0 : index
    %30 = vector.load %arg3[%c0_18, %c0_19] : memref<32x128xf32, #tpu.memory_space<vmem>>, vector<32x128xf32>
    %cst_20 = arith.constant dense<0.000000e+00> : vector<2x128xf32>
    %31 = tpu.matmul %27, %30, %cst_20 {dimension_numbers = #tpu.dot_dimension_numbers<[1], [0], [0], [1], [0, 0, 1, 1], [], []>} : vector<2x32xf32>, vector<32x128xf32>, vector<2x128xf32> -> vector<2x128xf32>
    %32 = arith.addf %29, %31 : vector<2x128xf32>
    %33 = arith.negf %32 : vector<2x128xf32>
    %34 = math.exp %33 : vector<2x128xf32>
    %cst_21 = arith.constant 1.000000e+00 : f32
    %35 = vector.broadcast %cst_21 : f32 to vector<2x128xf32>
    %36 = arith.addf %35, %34 : vector<2x128xf32>
    %37 = arith.divf %35, %36 : vector<2x128xf32>
    %38 = math.tanh %32 : vector<2x128xf32>
    %39 = vector.extract_strided_slice %37 {offsets = [0, 0], sizes = [2, 32], strides = [1, 1]} : vector<2x128xf32> to vector<2x32xf32>
    %40 = vector.extract_strided_slice %37 {offsets = [0, 32], sizes = [2, 32], strides = [1, 1]} : vector<2x128xf32> to vector<2x32xf32>
    %41 = vector.extract_strided_slice %38 {offsets = [0, 64], sizes = [2, 32], strides = [1, 1]} : vector<2x128xf32> to vector<2x32xf32>
    %42 = vector.extract_strided_slice %37 {offsets = [0, 96], sizes = [2, 32], strides = [1, 1]} : vector<2x128xf32> to vector<2x32xf32>
    %43 = arith.mulf %40, %25 : vector<2x32xf32>
    %44 = arith.mulf %39, %41 : vector<2x32xf32>
    %45 = arith.addf %43, %44 : vector<2x32xf32>
    %46 = math.tanh %45 : vector<2x32xf32>
    %47 = arith.mulf %42, %46 : vector<2x32xf32>
    %c2_22 = arith.constant 2 : index
    %c0_23 = arith.constant 0 : index
    %48 = vector.load %arg11[%c2_22, %c0_23] : memref<16x32xf32, #tpu.memory_space<vmem>>, vector<2x32xf32>
    tpu.vector_store %arg11[%c2_22, %c0_23], %47 {strides = array<i32>} : memref<16x32xf32, #tpu.memory_space<vmem>>, vector<2x32xf32>,
    %c4 = arith.constant 4 : index
    %c0_24 = arith.constant 0 : index
    %49 = vector.load %arg10[%c4, %c0_24] : memref<16x128xf32, #tpu.memory_space<vmem>>, vector<2x128xf32>
    %c0_25 = arith.constant 0 : index
    %c0_26 = arith.constant 0 : index
    %50 = vector.load %arg3[%c0_25, %c0_26] : memref<32x128xf32, #tpu.memory_space<vmem>>, vector<32x128xf32>
    %cst_27 = arith.constant dense<0.000000e+00> : vector<2x128xf32>
    %51 = tpu.matmul %47, %50, %cst_27 {dimension_numbers = #tpu.dot_dimension_numbers<[1], [0], [0], [1], [0, 0, 1, 1], [], []>} : vector<2x32xf32>, vector<32x128xf32>, vector<2x128xf32> -> vector<2x128xf32>
    %52 = arith.addf %49, %51 : vector<2x128xf32>
    %53 = arith.negf %52 : vector<2x128xf32>
    %54 = math.exp %53 : vector<2x128xf32>
    %cst_28 = arith.constant 1.000000e+00 : f32
    %55 = vector.broadcast %cst_28 : f32 to vector<2x128xf32>
    %56 = arith.addf %55, %54 : vector<2x128xf32>
    %57 = arith.divf %55, %56 : vector<2x128xf32>
    %58 = math.tanh %52 : vector<2x128xf32>
    %59 = vector.extract_strided_slice %57 {offsets = [0, 0], sizes = [2, 32], strides = [1, 1]} : vector<2x128xf32> to vector<2x32xf32>
    %60 = vector.extract_strided_slice %57 {offsets = [0, 32], sizes = [2, 32], strides = [1, 1]} : vector<2x128xf32> to vector<2x32xf32>
    %61 = vector.extract_strided_slice %58 {offsets = [0, 64], sizes = [2, 32], strides = [1, 1]} : vector<2x128xf32> to vector<2x32xf32>
    %62 = vector.extract_strided_slice %57 {offsets = [0, 96], sizes = [2, 32], strides = [1, 1]} : vector<2x128xf32> to vector<2x32xf32>
    %63 = arith.mulf %60, %45 : vector<2x32xf32>
    %64 = arith.mulf %59, %61 : vector<2x32xf32>
    %65 = arith.addf %63, %64 : vector<2x32xf32>
    %66 = math.tanh %65 : vector<2x32xf32>
    %67 = arith.mulf %62, %66 : vector<2x32xf32>
    %c4_29 = arith.constant 4 : index
    %c0_30 = arith.constant 0 : index
    %68 = vector.load %arg11[%c4_29, %c0_30] : memref<16x32xf32, #tpu.memory_space<vmem>>, vector<2x32xf32>
    tpu.vector_store %arg11[%c4_29, %c0_30], %67 {strides = array<i32>} : memref<16x32xf32, #tpu.memory_space<vmem>>, vector<2x32xf32>,
    %c6 = arith.constant 6 : index
    %c0_31 = arith.constant 0 : index
    %69 = vector.load %arg10[%c6, %c0_31] : memref<16x128xf32, #tpu.memory_space<vmem>>, vector<2x128xf32>
    %c0_32 = arith.constant 0 : index
    %c0_33 = arith.constant 0 : index
    %70 = vector.load %arg3[%c0_32, %c0_33] : memref<32x128xf32, #tpu.memory_space<vmem>>, vector<32x128xf32>
    %cst_34 = arith.constant dense<0.000000e+00> : vector<2x128xf32>
    %71 = tpu.matmul %67, %70, %cst_34 {dimension_numbers = #tpu.dot_dimension_numbers<[1], [0], [0], [1], [0, 0, 1, 1], [], []>} : vector<2x32xf32>, vector<32x128xf32>, vector<2x128xf32> -> vector<2x128xf32>
    %72 = arith.addf %69, %71 : vector<2x128xf32>
    %73 = arith.negf %72 : vector<2x128xf32>
    %74 = math.exp %73 : vector<2x128xf32>
    %cst_35 = arith.constant 1.000000e+00 : f32
    %75 = vector.broadcast %cst_35 : f32 to vector<2x128xf32>
    %76 = arith.addf %75, %74 : vector<2x128xf32>
    %77 = arith.divf %75, %76 : vector<2x128xf32>
    %78 = math.tanh %72 : vector<2x128xf32>
    %79 = vector.extract_strided_slice %77 {offsets = [0, 0], sizes = [2, 32], strides = [1, 1]} : vector<2x128xf32> to vector<2x32xf32>
    %80 = vector.extract_strided_slice %77 {offsets = [0, 32], sizes = [2, 32], strides = [1, 1]} : vector<2x128xf32> to vector<2x32xf32>
    %81 = vector.extract_strided_slice %78 {offsets = [0, 64], sizes = [2, 32], strides = [1, 1]} : vector<2x128xf32> to vector<2x32xf32>
    %82 = vector.extract_strided_slice %77 {offsets = [0, 96], sizes = [2, 32], strides = [1, 1]} : vector<2x128xf32> to vector<2x32xf32>
    %83 = arith.mulf %80, %65 : vector<2x32xf32>
    %84 = arith.mulf %79, %81 : vector<2x32xf32>
    %85 = arith.addf %83, %84 : vector<2x32xf32>
    %86 = math.tanh %85 : vector<2x32xf32>
    %87 = arith.mulf %82, %86 : vector<2x32xf32>
    %c6_36 = arith.constant 6 : index
    %c0_37 = arith.constant 0 : index
    %88 = vector.load %arg11[%c6_36, %c0_37] : memref<16x32xf32, #tpu.memory_space<vmem>>, vector<2x32xf32>
    tpu.vector_store %arg11[%c6_36, %c0_37], %87 {strides = array<i32>} : memref<16x32xf32, #tpu.memory_space<vmem>>, vector<2x32xf32>,
    %c8 = arith.constant 8 : index
    %c0_38 = arith.constant 0 : index
    %89 = vector.load %arg10[%c8, %c0_38] : memref<16x128xf32, #tpu.memory_space<vmem>>, vector<2x128xf32>
    %c0_39 = arith.constant 0 : index
    %c0_40 = arith.constant 0 : index
    %90 = vector.load %arg3[%c0_39, %c0_40] : memref<32x128xf32, #tpu.memory_space<vmem>>, vector<32x128xf32>
    %cst_41 = arith.constant dense<0.000000e+00> : vector<2x128xf32>
    %91 = tpu.matmul %87, %90, %cst_41 {dimension_numbers = #tpu.dot_dimension_numbers<[1], [0], [0], [1], [0, 0, 1, 1], [], []>} : vector<2x32xf32>, vector<32x128xf32>, vector<2x128xf32> -> vector<2x128xf32>
    %92 = arith.addf %89, %91 : vector<2x128xf32>
    %93 = arith.negf %92 : vector<2x128xf32>
    %94 = math.exp %93 : vector<2x128xf32>
    %cst_42 = arith.constant 1.000000e+00 : f32
    %95 = vector.broadcast %cst_42 : f32 to vector<2x128xf32>
    %96 = arith.addf %95, %94 : vector<2x128xf32>
    %97 = arith.divf %95, %96 : vector<2x128xf32>
    %98 = math.tanh %92 : vector<2x128xf32>
    %99 = vector.extract_strided_slice %97 {offsets = [0, 0], sizes = [2, 32], strides = [1, 1]} : vector<2x128xf32> to vector<2x32xf32>
    %100 = vector.extract_strided_slice %97 {offsets = [0, 32], sizes = [2, 32], strides = [1, 1]} : vector<2x128xf32> to vector<2x32xf32>
    %101 = vector.extract_strided_slice %98 {offsets = [0, 64], sizes = [2, 32], strides = [1, 1]} : vector<2x128xf32> to vector<2x32xf32>
    %102 = vector.extract_strided_slice %97 {offsets = [0, 96], sizes = [2, 32], strides = [1, 1]} : vector<2x128xf32> to vector<2x32xf32>
    %103 = arith.mulf %100, %85 : vector<2x32xf32>
    %104 = arith.mulf %99, %101 : vector<2x32xf32>
    %105 = arith.addf %103, %104 : vector<2x32xf32>
    %106 = math.tanh %105 : vector<2x32xf32>
    %107 = arith.mulf %102, %106 : vector<2x32xf32>
    %c8_43 = arith.constant 8 : index
    %c0_44 = arith.constant 0 : index
    %108 = vector.load %arg11[%c8_43, %c0_44] : memref<16x32xf32, #tpu.memory_space<vmem>>, vector<2x32xf32>
    tpu.vector_store %arg11[%c8_43, %c0_44], %107 {strides = array<i32>} : memref<16x32xf32, #tpu.memory_space<vmem>>, vector<2x32xf32>,
    %c10 = arith.constant 10 : index
    %c0_45 = arith.constant 0 : index
    %109 = vector.load %arg10[%c10, %c0_45] : memref<16x128xf32, #tpu.memory_space<vmem>>, vector<2x128xf32>
    %c0_46 = arith.constant 0 : index
    %c0_47 = arith.constant 0 : index
    %110 = vector.load %arg3[%c0_46, %c0_47] : memref<32x128xf32, #tpu.memory_space<vmem>>, vector<32x128xf32>
    %cst_48 = arith.constant dense<0.000000e+00> : vector<2x128xf32>
    %111 = tpu.matmul %107, %110, %cst_48 {dimension_numbers = #tpu.dot_dimension_numbers<[1], [0], [0], [1], [0, 0, 1, 1], [], []>} : vector<2x32xf32>, vector<32x128xf32>, vector<2x128xf32> -> vector<2x128xf32>
    %112 = arith.addf %109, %111 : vector<2x128xf32>
    %113 = arith.negf %112 : vector<2x128xf32>
    %114 = math.exp %113 : vector<2x128xf32>
    %cst_49 = arith.constant 1.000000e+00 : f32
    %115 = vector.broadcast %cst_49 : f32 to vector<2x128xf32>
    %116 = arith.addf %115, %114 : vector<2x128xf32>
    %117 = arith.divf %115, %116 : vector<2x128xf32>
    %118 = math.tanh %112 : vector<2x128xf32>
    %119 = vector.extract_strided_slice %117 {offsets = [0, 0], sizes = [2, 32], strides = [1, 1]} : vector<2x128xf32> to vector<2x32xf32>
    %120 = vector.extract_strided_slice %117 {offsets = [0, 32], sizes = [2, 32], strides = [1, 1]} : vector<2x128xf32> to vector<2x32xf32>
    %121 = vector.extract_strided_slice %118 {offsets = [0, 64], sizes = [2, 32], strides = [1, 1]} : vector<2x128xf32> to vector<2x32xf32>
    %122 = vector.extract_strided_slice %117 {offsets = [0, 96], sizes = [2, 32], strides = [1, 1]} : vector<2x128xf32> to vector<2x32xf32>
    %123 = arith.mulf %120, %105 : vector<2x32xf32>
    %124 = arith.mulf %119, %121 : vector<2x32xf32>
    %125 = arith.addf %123, %124 : vector<2x32xf32>
    %126 = math.tanh %125 : vector<2x32xf32>
    %127 = arith.mulf %122, %126 : vector<2x32xf32>
    %c10_50 = arith.constant 10 : index
    %c0_51 = arith.constant 0 : index
    %128 = vector.load %arg11[%c10_50, %c0_51] : memref<16x32xf32, #tpu.memory_space<vmem>>, vector<2x32xf32>
    tpu.vector_store %arg11[%c10_50, %c0_51], %127 {strides = array<i32>} : memref<16x32xf32, #tpu.memory_space<vmem>>, vector<2x32xf32>,
    %c12 = arith.constant 12 : index
    %c0_52 = arith.constant 0 : index
    %129 = vector.load %arg10[%c12, %c0_52] : memref<16x128xf32, #tpu.memory_space<vmem>>, vector<2x128xf32>
    %c0_53 = arith.constant 0 : index
    %c0_54 = arith.constant 0 : index
    %130 = vector.load %arg3[%c0_53, %c0_54] : memref<32x128xf32, #tpu.memory_space<vmem>>, vector<32x128xf32>
    %cst_55 = arith.constant dense<0.000000e+00> : vector<2x128xf32>
    %131 = tpu.matmul %127, %130, %cst_55 {dimension_numbers = #tpu.dot_dimension_numbers<[1], [0], [0], [1], [0, 0, 1, 1], [], []>} : vector<2x32xf32>, vector<32x128xf32>, vector<2x128xf32> -> vector<2x128xf32>
    %132 = arith.addf %129, %131 : vector<2x128xf32>
    %133 = arith.negf %132 : vector<2x128xf32>
    %134 = math.exp %133 : vector<2x128xf32>
    %cst_56 = arith.constant 1.000000e+00 : f32
    %135 = vector.broadcast %cst_56 : f32 to vector<2x128xf32>
    %136 = arith.addf %135, %134 : vector<2x128xf32>
    %137 = arith.divf %135, %136 : vector<2x128xf32>
    %138 = math.tanh %132 : vector<2x128xf32>
    %139 = vector.extract_strided_slice %137 {offsets = [0, 0], sizes = [2, 32], strides = [1, 1]} : vector<2x128xf32> to vector<2x32xf32>
    %140 = vector.extract_strided_slice %137 {offsets = [0, 32], sizes = [2, 32], strides = [1, 1]} : vector<2x128xf32> to vector<2x32xf32>
    %141 = vector.extract_strided_slice %138 {offsets = [0, 64], sizes = [2, 32], strides = [1, 1]} : vector<2x128xf32> to vector<2x32xf32>
    %142 = vector.extract_strided_slice %137 {offsets = [0, 96], sizes = [2, 32], strides = [1, 1]} : vector<2x128xf32> to vector<2x32xf32>
    %143 = arith.mulf %140, %125 : vector<2x32xf32>
    %144 = arith.mulf %139, %141 : vector<2x32xf32>
    %145 = arith.addf %143, %144 : vector<2x32xf32>
    %146 = math.tanh %145 : vector<2x32xf32>
    %147 = arith.mulf %142, %146 : vector<2x32xf32>
    %c12_57 = arith.constant 12 : index
    %c0_58 = arith.constant 0 : index
    %148 = vector.load %arg11[%c12_57, %c0_58] : memref<16x32xf32, #tpu.memory_space<vmem>>, vector<2x32xf32>
    tpu.vector_store %arg11[%c12_57, %c0_58], %147 {strides = array<i32>} : memref<16x32xf32, #tpu.memory_space<vmem>>, vector<2x32xf32>,
    %c14 = arith.constant 14 : index
    %c0_59 = arith.constant 0 : index
    %149 = vector.load %arg10[%c14, %c0_59] : memref<16x128xf32, #tpu.memory_space<vmem>>, vector<2x128xf32>
    %c0_60 = arith.constant 0 : index
    %c0_61 = arith.constant 0 : index
    %150 = vector.load %arg3[%c0_60, %c0_61] : memref<32x128xf32, #tpu.memory_space<vmem>>, vector<32x128xf32>
    %cst_62 = arith.constant dense<0.000000e+00> : vector<2x128xf32>
    %151 = tpu.matmul %147, %150, %cst_62 {dimension_numbers = #tpu.dot_dimension_numbers<[1], [0], [0], [1], [0, 0, 1, 1], [], []>} : vector<2x32xf32>, vector<32x128xf32>, vector<2x128xf32> -> vector<2x128xf32>
    %152 = arith.addf %149, %151 : vector<2x128xf32>
    %153 = arith.negf %152 : vector<2x128xf32>
    %154 = math.exp %153 : vector<2x128xf32>
    %cst_63 = arith.constant 1.000000e+00 : f32
    %155 = vector.broadcast %cst_63 : f32 to vector<2x128xf32>
    %156 = arith.addf %155, %154 : vector<2x128xf32>
    %157 = arith.divf %155, %156 : vector<2x128xf32>
    %158 = math.tanh %152 : vector<2x128xf32>
    %159 = vector.extract_strided_slice %157 {offsets = [0, 0], sizes = [2, 32], strides = [1, 1]} : vector<2x128xf32> to vector<2x32xf32>
    %160 = vector.extract_strided_slice %157 {offsets = [0, 32], sizes = [2, 32], strides = [1, 1]} : vector<2x128xf32> to vector<2x32xf32>
    %161 = vector.extract_strided_slice %158 {offsets = [0, 64], sizes = [2, 32], strides = [1, 1]} : vector<2x128xf32> to vector<2x32xf32>
    %162 = vector.extract_strided_slice %157 {offsets = [0, 96], sizes = [2, 32], strides = [1, 1]} : vector<2x128xf32> to vector<2x32xf32>
    %163 = arith.mulf %160, %145 : vector<2x32xf32>
    %164 = arith.mulf %159, %161 : vector<2x32xf32>
    %165 = arith.addf %163, %164 : vector<2x32xf32>
    %166 = math.tanh %165 : vector<2x32xf32>
    %167 = arith.mulf %162, %166 : vector<2x32xf32>
    %c14_64 = arith.constant 14 : index
    %c0_65 = arith.constant 0 : index
    %168 = vector.load %arg11[%c14_64, %c0_65] : memref<16x32xf32, #tpu.memory_space<vmem>>, vector<2x32xf32>
    tpu.vector_store %arg11[%c14_64, %c0_65], %167 {strides = array<i32>} : memref<16x32xf32, #tpu.memory_space<vmem>>, vector<2x32xf32>,
    %c0_66 = arith.constant 0 : index
    %c0_67 = arith.constant 0 : index
    %c0_68 = arith.constant 0 : index
    %169 = vector.load %arg8[%c0_66, %c0_67, %c0_68] : memref<2x2x32xf32, #tpu.memory_space<vmem>>, vector<1x2x32xf32>
    %170 = vector.shape_cast %169 : vector<1x2x32xf32> to vector<2x32xf32>
    %171 = vector.shape_cast %167 : vector<2x32xf32> to vector<1x2x32xf32>
    tpu.vector_store %arg8[%c0_66, %c0_67, %c0_68], %171 {strides = array<i32>} : memref<2x2x32xf32, #tpu.memory_space<vmem>>, vector<1x2x32xf32>,
    %c0_69 = arith.constant 0 : index
    %c0_70 = arith.constant 0 : index
    %c0_71 = arith.constant 0 : index
    %172 = vector.load %arg9[%c0_69, %c0_70, %c0_71] : memref<2x2x32xf32, #tpu.memory_space<vmem>>, vector<1x2x32xf32>
    %173 = vector.shape_cast %172 : vector<1x2x32xf32> to vector<2x32xf32>
    %174 = vector.shape_cast %165 : vector<2x32xf32> to vector<1x2x32xf32>
    tpu.vector_store %arg9[%c0_69, %c0_70, %c0_71], %174 {strides = array<i32>} : memref<2x2x32xf32, #tpu.memory_space<vmem>>, vector<1x2x32xf32>,
    %c0_72 = arith.constant 0 : index
    %c0_73 = arith.constant 0 : index
    %175 = vector.load %arg11[%c0_72, %c0_73] : memref<16x32xf32, #tpu.memory_space<vmem>>, vector<16x32xf32>
    %c0_74 = arith.constant 0 : index
    %c0_75 = arith.constant 0 : index
    %176 = vector.load %arg5[%c0_74, %c0_75] : memref<32x128xf32, #tpu.memory_space<vmem>>, vector<32x128xf32>
    %cst_76 = arith.constant dense<0.000000e+00> : vector<16x128xf32>
    %177 = tpu.matmul %175, %176, %cst_76 {dimension_numbers = #tpu.dot_dimension_numbers<[1], [0], [0], [1], [0, 0, 1, 1], [], []>} : vector<16x32xf32>, vector<32x128xf32>, vector<16x128xf32> -> vector<16x128xf32>
    %c0_77 = arith.constant 0 : index
    %c0_78 = arith.constant 0 : index
    %178 = vector.load %arg7[%c0_77, %c0_78] : memref<1x128xf32, #tpu.memory_space<vmem>>, vector<1x128xf32>
    %179 = vector.broadcast %178 : vector<1x128xf32> to vector<16x128xf32>
    %180 = arith.addf %177, %179 : vector<16x128xf32>
    %c0_79 = arith.constant 0 : index
    %c0_80 = arith.constant 0 : index
    %181 = vector.load %arg10[%c0_79, %c0_80] : memref<16x128xf32, #tpu.memory_space<vmem>>, vector<16x128xf32>
    tpu.vector_store %arg10[%c0_79, %c0_80], %180 {strides = array<i32>} : memref<16x128xf32, #tpu.memory_space<vmem>>, vector<16x128xf32>,
    %cst_81 = arith.constant 0.000000e+00 : f32
    %182 = vector.broadcast %cst_81 : f32 to vector<2x32xf32>
    %cst_82 = arith.constant 0.000000e+00 : f32
    %183 = vector.broadcast %cst_82 : f32 to vector<2x32xf32>
    %c0_83 = arith.constant 0 : index
    %c0_84 = arith.constant 0 : index
    %184 = vector.load %arg10[%c0_83, %c0_84] : memref<16x128xf32, #tpu.memory_space<vmem>>, vector<2x128xf32>
    %c0_85 = arith.constant 0 : index
    %c0_86 = arith.constant 0 : index
    %185 = vector.load %arg6[%c0_85, %c0_86] : memref<32x128xf32, #tpu.memory_space<vmem>>, vector<32x128xf32>
    %cst_87 = arith.constant dense<0.000000e+00> : vector<2x128xf32>
    %186 = tpu.matmul %182, %185, %cst_87 {dimension_numbers = #tpu.dot_dimension_numbers<[1], [0], [0], [1], [0, 0, 1, 1], [], []>} : vector<2x32xf32>, vector<32x128xf32>, vector<2x128xf32> -> vector<2x128xf32>
    %187 = arith.addf %184, %186 : vector<2x128xf32>
    %188 = arith.negf %187 : vector<2x128xf32>
    %189 = math.exp %188 : vector<2x128xf32>
    %cst_88 = arith.constant 1.000000e+00 : f32
    %190 = vector.broadcast %cst_88 : f32 to vector<2x128xf32>
    %191 = arith.addf %190, %189 : vector<2x128xf32>
    %192 = arith.divf %190, %191 : vector<2x128xf32>
    %193 = math.tanh %187 : vector<2x128xf32>
    %194 = vector.extract_strided_slice %192 {offsets = [0, 0], sizes = [2, 32], strides = [1, 1]} : vector<2x128xf32> to vector<2x32xf32>
    %195 = vector.extract_strided_slice %192 {offsets = [0, 32], sizes = [2, 32], strides = [1, 1]} : vector<2x128xf32> to vector<2x32xf32>
    %196 = vector.extract_strided_slice %193 {offsets = [0, 64], sizes = [2, 32], strides = [1, 1]} : vector<2x128xf32> to vector<2x32xf32>
    %197 = vector.extract_strided_slice %192 {offsets = [0, 96], sizes = [2, 32], strides = [1, 1]} : vector<2x128xf32> to vector<2x32xf32>
    %198 = arith.mulf %195, %183 : vector<2x32xf32>
    %199 = arith.mulf %194, %196 : vector<2x32xf32>
    %200 = arith.addf %198, %199 : vector<2x32xf32>
    %201 = math.tanh %200 : vector<2x32xf32>
    %202 = arith.mulf %197, %201 : vector<2x32xf32>
    %c2_89 = arith.constant 2 : index
    %c0_90 = arith.constant 0 : index
    %203 = vector.load %arg10[%c2_89, %c0_90] : memref<16x128xf32, #tpu.memory_space<vmem>>, vector<2x128xf32>
    %c0_91 = arith.constant 0 : index
    %c0_92 = arith.constant 0 : index
    %204 = vector.load %arg6[%c0_91, %c0_92] : memref<32x128xf32, #tpu.memory_space<vmem>>, vector<32x128xf32>
    %cst_93 = arith.constant dense<0.000000e+00> : vector<2x128xf32>
    %205 = tpu.matmul %202, %204, %cst_93 {dimension_numbers = #tpu.dot_dimension_numbers<[1], [0], [0], [1], [0, 0, 1, 1], [], []>} : vector<2x32xf32>, vector<32x128xf32>, vector<2x128xf32> -> vector<2x128xf32>
    %206 = arith.addf %203, %205 : vector<2x128xf32>
    %207 = arith.negf %206 : vector<2x128xf32>
    %208 = math.exp %207 : vector<2x128xf32>
    %cst_94 = arith.constant 1.000000e+00 : f32
    %209 = vector.broadcast %cst_94 : f32 to vector<2x128xf32>
    %210 = arith.addf %209, %208 : vector<2x128xf32>
    %211 = arith.divf %209, %210 : vector<2x128xf32>
    %212 = math.tanh %206 : vector<2x128xf32>
    %213 = vector.extract_strided_slice %211 {offsets = [0, 0], sizes = [2, 32], strides = [1, 1]} : vector<2x128xf32> to vector<2x32xf32>
    %214 = vector.extract_strided_slice %211 {offsets = [0, 32], sizes = [2, 32], strides = [1, 1]} : vector<2x128xf32> to vector<2x32xf32>
    %215 = vector.extract_strided_slice %212 {offsets = [0, 64], sizes = [2, 32], strides = [1, 1]} : vector<2x128xf32> to vector<2x32xf32>
    %216 = vector.extract_strided_slice %211 {offsets = [0, 96], sizes = [2, 32], strides = [1, 1]} : vector<2x128xf32> to vector<2x32xf32>
    %217 = arith.mulf %214, %200 : vector<2x32xf32>
    %218 = arith.mulf %213, %215 : vector<2x32xf32>
    %219 = arith.addf %217, %218 : vector<2x32xf32>
    %220 = math.tanh %219 : vector<2x32xf32>
    %221 = arith.mulf %216, %220 : vector<2x32xf32>
    %c4_95 = arith.constant 4 : index
    %c0_96 = arith.constant 0 : index
    %222 = vector.load %arg10[%c4_95, %c0_96] : memref<16x128xf32, #tpu.memory_space<vmem>>, vector<2x128xf32>
    %c0_97 = arith.constant 0 : index
    %c0_98 = arith.constant 0 : index
    %223 = vector.load %arg6[%c0_97, %c0_98] : memref<32x128xf32, #tpu.memory_space<vmem>>, vector<32x128xf32>
    %cst_99 = arith.constant dense<0.000000e+00> : vector<2x128xf32>
    %224 = tpu.matmul %221, %223, %cst_99 {dimension_numbers = #tpu.dot_dimension_numbers<[1], [0], [0], [1], [0, 0, 1, 1], [], []>} : vector<2x32xf32>, vector<32x128xf32>, vector<2x128xf32> -> vector<2x128xf32>
    %225 = arith.addf %222, %224 : vector<2x128xf32>
    %226 = arith.negf %225 : vector<2x128xf32>
    %227 = math.exp %226 : vector<2x128xf32>
    %cst_100 = arith.constant 1.000000e+00 : f32
    %228 = vector.broadcast %cst_100 : f32 to vector<2x128xf32>
    %229 = arith.addf %228, %227 : vector<2x128xf32>
    %230 = arith.divf %228, %229 : vector<2x128xf32>
    %231 = math.tanh %225 : vector<2x128xf32>
    %232 = vector.extract_strided_slice %230 {offsets = [0, 0], sizes = [2, 32], strides = [1, 1]} : vector<2x128xf32> to vector<2x32xf32>
    %233 = vector.extract_strided_slice %230 {offsets = [0, 32], sizes = [2, 32], strides = [1, 1]} : vector<2x128xf32> to vector<2x32xf32>
    %234 = vector.extract_strided_slice %231 {offsets = [0, 64], sizes = [2, 32], strides = [1, 1]} : vector<2x128xf32> to vector<2x32xf32>
    %235 = vector.extract_strided_slice %230 {offsets = [0, 96], sizes = [2, 32], strides = [1, 1]} : vector<2x128xf32> to vector<2x32xf32>
    %236 = arith.mulf %233, %219 : vector<2x32xf32>
    %237 = arith.mulf %232, %234 : vector<2x32xf32>
    %238 = arith.addf %236, %237 : vector<2x32xf32>
    %239 = math.tanh %238 : vector<2x32xf32>
    %240 = arith.mulf %235, %239 : vector<2x32xf32>
    %c6_101 = arith.constant 6 : index
    %c0_102 = arith.constant 0 : index
    %241 = vector.load %arg10[%c6_101, %c0_102] : memref<16x128xf32, #tpu.memory_space<vmem>>, vector<2x128xf32>
    %c0_103 = arith.constant 0 : index
    %c0_104 = arith.constant 0 : index
    %242 = vector.load %arg6[%c0_103, %c0_104] : memref<32x128xf32, #tpu.memory_space<vmem>>, vector<32x128xf32>
    %cst_105 = arith.constant dense<0.000000e+00> : vector<2x128xf32>
    %243 = tpu.matmul %240, %242, %cst_105 {dimension_numbers = #tpu.dot_dimension_numbers<[1], [0], [0], [1], [0, 0, 1, 1], [], []>} : vector<2x32xf32>, vector<32x128xf32>, vector<2x128xf32> -> vector<2x128xf32>
    %244 = arith.addf %241, %243 : vector<2x128xf32>
    %245 = arith.negf %244 : vector<2x128xf32>
    %246 = math.exp %245 : vector<2x128xf32>
    %cst_106 = arith.constant 1.000000e+00 : f32
    %247 = vector.broadcast %cst_106 : f32 to vector<2x128xf32>
    %248 = arith.addf %247, %246 : vector<2x128xf32>
    %249 = arith.divf %247, %248 : vector<2x128xf32>
    %250 = math.tanh %244 : vector<2x128xf32>
    %251 = vector.extract_strided_slice %249 {offsets = [0, 0], sizes = [2, 32], strides = [1, 1]} : vector<2x128xf32> to vector<2x32xf32>
    %252 = vector.extract_strided_slice %249 {offsets = [0, 32], sizes = [2, 32], strides = [1, 1]} : vector<2x128xf32> to vector<2x32xf32>
    %253 = vector.extract_strided_slice %250 {offsets = [0, 64], sizes = [2, 32], strides = [1, 1]} : vector<2x128xf32> to vector<2x32xf32>
    %254 = vector.extract_strided_slice %249 {offsets = [0, 96], sizes = [2, 32], strides = [1, 1]} : vector<2x128xf32> to vector<2x32xf32>
    %255 = arith.mulf %252, %238 : vector<2x32xf32>
    %256 = arith.mulf %251, %253 : vector<2x32xf32>
    %257 = arith.addf %255, %256 : vector<2x32xf32>
    %258 = math.tanh %257 : vector<2x32xf32>
    %259 = arith.mulf %254, %258 : vector<2x32xf32>
    %c8_107 = arith.constant 8 : index
    %c0_108 = arith.constant 0 : index
    %260 = vector.load %arg10[%c8_107, %c0_108] : memref<16x128xf32, #tpu.memory_space<vmem>>, vector<2x128xf32>
    %c0_109 = arith.constant 0 : index
    %c0_110 = arith.constant 0 : index
    %261 = vector.load %arg6[%c0_109, %c0_110] : memref<32x128xf32, #tpu.memory_space<vmem>>, vector<32x128xf32>
    %cst_111 = arith.constant dense<0.000000e+00> : vector<2x128xf32>
    %262 = tpu.matmul %259, %261, %cst_111 {dimension_numbers = #tpu.dot_dimension_numbers<[1], [0], [0], [1], [0, 0, 1, 1], [], []>} : vector<2x32xf32>, vector<32x128xf32>, vector<2x128xf32> -> vector<2x128xf32>
    %263 = arith.addf %260, %262 : vector<2x128xf32>
    %264 = arith.negf %263 : vector<2x128xf32>
    %265 = math.exp %264 : vector<2x128xf32>
    %cst_112 = arith.constant 1.000000e+00 : f32
    %266 = vector.broadcast %cst_112 : f32 to vector<2x128xf32>
    %267 = arith.addf %266, %265 : vector<2x128xf32>
    %268 = arith.divf %266, %267 : vector<2x128xf32>
    %269 = math.tanh %263 : vector<2x128xf32>
    %270 = vector.extract_strided_slice %268 {offsets = [0, 0], sizes = [2, 32], strides = [1, 1]} : vector<2x128xf32> to vector<2x32xf32>
    %271 = vector.extract_strided_slice %268 {offsets = [0, 32], sizes = [2, 32], strides = [1, 1]} : vector<2x128xf32> to vector<2x32xf32>
    %272 = vector.extract_strided_slice %269 {offsets = [0, 64], sizes = [2, 32], strides = [1, 1]} : vector<2x128xf32> to vector<2x32xf32>
    %273 = vector.extract_strided_slice %268 {offsets = [0, 96], sizes = [2, 32], strides = [1, 1]} : vector<2x128xf32> to vector<2x32xf32>
    %274 = arith.mulf %271, %257 : vector<2x32xf32>
    %275 = arith.mulf %270, %272 : vector<2x32xf32>
    %276 = arith.addf %274, %275 : vector<2x32xf32>
    %277 = math.tanh %276 : vector<2x32xf32>
    %278 = arith.mulf %273, %277 : vector<2x32xf32>
    %c10_113 = arith.constant 10 : index
    %c0_114 = arith.constant 0 : index
    %279 = vector.load %arg10[%c10_113, %c0_114] : memref<16x128xf32, #tpu.memory_space<vmem>>, vector<2x128xf32>
    %c0_115 = arith.constant 0 : index
    %c0_116 = arith.constant 0 : index
    %280 = vector.load %arg6[%c0_115, %c0_116] : memref<32x128xf32, #tpu.memory_space<vmem>>, vector<32x128xf32>
    %cst_117 = arith.constant dense<0.000000e+00> : vector<2x128xf32>
    %281 = tpu.matmul %278, %280, %cst_117 {dimension_numbers = #tpu.dot_dimension_numbers<[1], [0], [0], [1], [0, 0, 1, 1], [], []>} : vector<2x32xf32>, vector<32x128xf32>, vector<2x128xf32> -> vector<2x128xf32>
    %282 = arith.addf %279, %281 : vector<2x128xf32>
    %283 = arith.negf %282 : vector<2x128xf32>
    %284 = math.exp %283 : vector<2x128xf32>
    %cst_118 = arith.constant 1.000000e+00 : f32
    %285 = vector.broadcast %cst_118 : f32 to vector<2x128xf32>
    %286 = arith.addf %285, %284 : vector<2x128xf32>
    %287 = arith.divf %285, %286 : vector<2x128xf32>
    %288 = math.tanh %282 : vector<2x128xf32>
    %289 = vector.extract_strided_slice %287 {offsets = [0, 0], sizes = [2, 32], strides = [1, 1]} : vector<2x128xf32> to vector<2x32xf32>
    %290 = vector.extract_strided_slice %287 {offsets = [0, 32], sizes = [2, 32], strides = [1, 1]} : vector<2x128xf32> to vector<2x32xf32>
    %291 = vector.extract_strided_slice %288 {offsets = [0, 64], sizes = [2, 32], strides = [1, 1]} : vector<2x128xf32> to vector<2x32xf32>
    %292 = vector.extract_strided_slice %287 {offsets = [0, 96], sizes = [2, 32], strides = [1, 1]} : vector<2x128xf32> to vector<2x32xf32>
    %293 = arith.mulf %290, %276 : vector<2x32xf32>
    %294 = arith.mulf %289, %291 : vector<2x32xf32>
    %295 = arith.addf %293, %294 : vector<2x32xf32>
    %296 = math.tanh %295 : vector<2x32xf32>
    %297 = arith.mulf %292, %296 : vector<2x32xf32>
    %c12_119 = arith.constant 12 : index
    %c0_120 = arith.constant 0 : index
    %298 = vector.load %arg10[%c12_119, %c0_120] : memref<16x128xf32, #tpu.memory_space<vmem>>, vector<2x128xf32>
    %c0_121 = arith.constant 0 : index
    %c0_122 = arith.constant 0 : index
    %299 = vector.load %arg6[%c0_121, %c0_122] : memref<32x128xf32, #tpu.memory_space<vmem>>, vector<32x128xf32>
    %cst_123 = arith.constant dense<0.000000e+00> : vector<2x128xf32>
    %300 = tpu.matmul %297, %299, %cst_123 {dimension_numbers = #tpu.dot_dimension_numbers<[1], [0], [0], [1], [0, 0, 1, 1], [], []>} : vector<2x32xf32>, vector<32x128xf32>, vector<2x128xf32> -> vector<2x128xf32>
    %301 = arith.addf %298, %300 : vector<2x128xf32>
    %302 = arith.negf %301 : vector<2x128xf32>
    %303 = math.exp %302 : vector<2x128xf32>
    %cst_124 = arith.constant 1.000000e+00 : f32
    %304 = vector.broadcast %cst_124 : f32 to vector<2x128xf32>
    %305 = arith.addf %304, %303 : vector<2x128xf32>
    %306 = arith.divf %304, %305 : vector<2x128xf32>
    %307 = math.tanh %301 : vector<2x128xf32>
    %308 = vector.extract_strided_slice %306 {offsets = [0, 0], sizes = [2, 32], strides = [1, 1]} : vector<2x128xf32> to vector<2x32xf32>
    %309 = vector.extract_strided_slice %306 {offsets = [0, 32], sizes = [2, 32], strides = [1, 1]} : vector<2x128xf32> to vector<2x32xf32>
    %310 = vector.extract_strided_slice %307 {offsets = [0, 64], sizes = [2, 32], strides = [1, 1]} : vector<2x128xf32> to vector<2x32xf32>
    %311 = vector.extract_strided_slice %306 {offsets = [0, 96], sizes = [2, 32], strides = [1, 1]} : vector<2x128xf32> to vector<2x32xf32>
    %312 = arith.mulf %309, %295 : vector<2x32xf32>
    %313 = arith.mulf %308, %310 : vector<2x32xf32>
    %314 = arith.addf %312, %313 : vector<2x32xf32>
    %315 = math.tanh %314 : vector<2x32xf32>
    %316 = arith.mulf %311, %315 : vector<2x32xf32>
    %c14_125 = arith.constant 14 : index
    %c0_126 = arith.constant 0 : index
    %317 = vector.load %arg10[%c14_125, %c0_126] : memref<16x128xf32, #tpu.memory_space<vmem>>, vector<2x128xf32>
    %c0_127 = arith.constant 0 : index
    %c0_128 = arith.constant 0 : index
    %318 = vector.load %arg6[%c0_127, %c0_128] : memref<32x128xf32, #tpu.memory_space<vmem>>, vector<32x128xf32>
    %cst_129 = arith.constant dense<0.000000e+00> : vector<2x128xf32>
    %319 = tpu.matmul %316, %318, %cst_129 {dimension_numbers = #tpu.dot_dimension_numbers<[1], [0], [0], [1], [0, 0, 1, 1], [], []>} : vector<2x32xf32>, vector<32x128xf32>, vector<2x128xf32> -> vector<2x128xf32>
    %320 = arith.addf %317, %319 : vector<2x128xf32>
    %321 = arith.negf %320 : vector<2x128xf32>
    %322 = math.exp %321 : vector<2x128xf32>
    %cst_130 = arith.constant 1.000000e+00 : f32
    %323 = vector.broadcast %cst_130 : f32 to vector<2x128xf32>
    %324 = arith.addf %323, %322 : vector<2x128xf32>
    %325 = arith.divf %323, %324 : vector<2x128xf32>
    %326 = math.tanh %320 : vector<2x128xf32>
    %327 = vector.extract_strided_slice %325 {offsets = [0, 0], sizes = [2, 32], strides = [1, 1]} : vector<2x128xf32> to vector<2x32xf32>
    %328 = vector.extract_strided_slice %325 {offsets = [0, 32], sizes = [2, 32], strides = [1, 1]} : vector<2x128xf32> to vector<2x32xf32>
    %329 = vector.extract_strided_slice %326 {offsets = [0, 64], sizes = [2, 32], strides = [1, 1]} : vector<2x128xf32> to vector<2x32xf32>
    %330 = vector.extract_strided_slice %325 {offsets = [0, 96], sizes = [2, 32], strides = [1, 1]} : vector<2x128xf32> to vector<2x32xf32>
    %331 = arith.mulf %328, %314 : vector<2x32xf32>
    %332 = arith.mulf %327, %329 : vector<2x32xf32>
    %333 = arith.addf %331, %332 : vector<2x32xf32>
    %334 = math.tanh %333 : vector<2x32xf32>
    %335 = arith.mulf %330, %334 : vector<2x32xf32>
    %c1 = arith.constant 1 : index
    %c0_131 = arith.constant 0 : index
    %c0_132 = arith.constant 0 : index
    %336 = vector.load %arg8[%c1, %c0_131, %c0_132] : memref<2x2x32xf32, #tpu.memory_space<vmem>>, vector<1x2x32xf32>
    %337 = vector.shape_cast %336 : vector<1x2x32xf32> to vector<2x32xf32>
    %338 = vector.shape_cast %335 : vector<2x32xf32> to vector<1x2x32xf32>
    tpu.vector_store %arg8[%c1, %c0_131, %c0_132], %338 {strides = array<i32>} : memref<2x2x32xf32, #tpu.memory_space<vmem>>, vector<1x2x32xf32>,
    %c1_133 = arith.constant 1 : index
    %c0_134 = arith.constant 0 : index
    %c0_135 = arith.constant 0 : index
    %339 = vector.load %arg9[%c1_133, %c0_134, %c0_135] : memref<2x2x32xf32, #tpu.memory_space<vmem>>, vector<1x2x32xf32>
    %340 = vector.shape_cast %339 : vector<1x2x32xf32> to vector<2x32xf32>
    %341 = vector.shape_cast %333 : vector<2x32xf32> to vector<1x2x32xf32>
    tpu.vector_store %arg9[%c1_133, %c0_134, %c0_135], %341 {strides = array<i32>} : memref<2x2x32xf32, #tpu.memory_space<vmem>>, vector<1x2x32xf32>,
    return
  }
  func.func @transform_0(%arg0: i32) -> (i32, i32) {
    %c0_i32 = arith.constant 0 : i32
    %c0_i32_0 = arith.constant 0 : i32
    %c0_i32_1 = arith.constant 0 : i32
    return %c0_i32, %c0_i32_0 : i32, i32
  }
  func.func @transform_1(%arg0: i32) -> (i32, i32) {
    %c0_i32 = arith.constant 0 : i32
    %c0_i32_0 = arith.constant 0 : i32
    %c0_i32_1 = arith.constant 0 : i32
    return %c0_i32, %c0_i32_0 : i32, i32
  }
  func.func @transform_2(%arg0: i32) -> (i32, i32) {
    %c0_i32 = arith.constant 0 : i32
    %c0_i32_0 = arith.constant 0 : i32
    %c0_i32_1 = arith.constant 0 : i32
    return %c0_i32, %c0_i32_0 : i32, i32
  }
  func.func @transform_3(%arg0: i32) -> (i32, i32) {
    %c0_i32 = arith.constant 0 : i32
    %c0_i32_0 = arith.constant 0 : i32
    %c0_i32_1 = arith.constant 0 : i32
    return %c0_i32, %c0_i32_0 : i32, i32
  }
  func.func @transform_4(%arg0: i32) -> (i32, i32) {
    %c0_i32 = arith.constant 0 : i32
    %c0_i32_0 = arith.constant 0 : i32
    %c0_i32_1 = arith.constant 0 : i32
    return %c0_i32, %c0_i32_0 : i32, i32
  }
  func.func @transform_5(%arg0: i32) -> (i32, i32) {
    %c0_i32 = arith.constant 0 : i32
    %c0_i32_0 = arith.constant 0 : i32
    %c0_i32_1 = arith.constant 0 : i32
    return %c0_i32, %c0_i32_0 : i32, i32
  }
  func.func @transform_6(%arg0: i32) -> (i32, i32) {
    %c0_i32 = arith.constant 0 : i32
    %c0_i32_0 = arith.constant 0 : i32
    %c0_i32_1 = arith.constant 0 : i32
    return %c0_i32, %c0_i32_0 : i32, i32
  }
  func.func @transform_7(%arg0: i32) -> (i32, i32, i32) {
    %c0_i32 = arith.constant 0 : i32
    %c0_i32_0 = arith.constant 0 : i32
    %c0_i32_1 = arith.constant 0 : i32
    %c0_i32_2 = arith.constant 0 : i32
    return %c0_i32, %c0_i32_0, %c0_i32_1 : i32, i32, i32
  }
  func.func @transform_8(%arg0: i32) -> (i32, i32, i32) {
    %c0_i32 = arith.constant 0 : i32
    %c0_i32_0 = arith.constant 0 : i32
    %c0_i32_1 = arith.constant 0 : i32
    %c0_i32_2 = arith.constant 0 : i32
    return %c0_i32, %c0_i32_0, %c0_i32_1 : i32, i32, i32
  }
}

</mosaic_0001>

<bundles_post_ra>
// kernel: tpu_custom_call.1
= control target key start
LH: loop header
LB: loop body
LE: loop exit
PB: predicated region body
PF: predicated region fallthrough
CT: control target
= control target key end

     0   :  { %14 = vsyncpa [#allocation5], 0  ;;  %s3010_s0 = inlined_call_operand.hbm [shape: f32[16,32], index: 0, kind: input, shape index: {}]   ;;  %s3011_s1 = inlined_call_operand.hbm [shape: f32[32,128], index: 1, kind: input, shape index: {}]   ;;  %s3012_s2 = inlined_call_operand.hbm [shape: f32[32,128], index: 2, kind: input, shape index: {}]   ;;  %s3013_s3 = inlined_call_operand.vmem [shape: f32[1,128], index: 3, kind: input, shape index: {}]   ;;  %s3014_s4 = inlined_call_operand.hbm [shape: f32[32,128], index: 4, kind: input, shape index: {}]   ;;  %s3015_s5 = inlined_call_operand.hbm [shape: f32[32,128], index: 5, kind: input, shape index: {}]   ;;  %s3016_s6 = inlined_call_operand.vmem [shape: f32[1,128], index: 6, kind: input, shape index: {}]   ;;  %s3017_s7 = inlined_call_operand.hbm [shape: f32[2,2,32], index: 7, kind: output, shape index: {0}]   ;;  %s3018_s8 = inlined_call_operand.hbm [shape: f32[2,2,32], index: 8, kind: output, shape index: {1}]  }
   0x1   :  { %15 = vsyncpa [#allocation8], 0 }
   0x2   :  { %16 = vsyncpa [#allocation11], 0 }
   0x3   :  { %17 = vsyncpa [#allocation6], 0 }
   0x4   :  { %18 = vsyncpa [#allocation15], 0  ;;  %s2628_s27 = smov [#allocation7]   ;;  %s2629_s29 = smov [#allocation10]  }
   0x5   :  { %s36_s28 = sshll.u32 %s2628_s27, 4  ;;  %s62_s30 = sshll.u32 %s2629_s29, 4  ;;  %s37_s28 = int_to_ptr.vmem [resolvable:$true] %s36_s28  ;;  %s63_s30 = int_to_ptr.vmem [resolvable:$true] %s62_s30 }
   0x6   :  { %s2486_s9 = scalar_lea.vmem %s37_s28, 512  ;;  %p2491_p1 = scmp.lt.s32.totalorder %s37_s28, %s37_s28 }
   0x7   :  { %p2487_p0 = scmp.ne.s32.totalorder %s37_s28, %s2486_s9  ;;  %p2492_p2 = scmp.lt.s32.totalorder %s2486_s9, %s2486_s9 }
   0x9   :  { %p2493_p3 = por %p2492_p2, %p2491_p1 }
   0xb   :  { %p2494_p4 = pnand %p2493_p3, %p2487_p0 }
   0xd   :  { %2497 = shalt.err (!%p2494_p4)
}
   0xe   :  { %s2630_s10 = smov 128   ;;  %s2631_s11 = smov 8  }
   0xf   :  { %42 = dma.hbm_to_vmem [thread:$0]  %s3011_s1, 512, %s37_s28, [#allocation8], %s2630_s10, %s2630_s10, %s2631_s11  }
  0x10   :  { %s2506_s14 = scalar_lea.vmem %s63_s30, 512  ;;  %p2511_p6 = scmp.lt.s32.totalorder %s63_s30, %s63_s30 }
  0x11   :  { %p2507_p5 = scmp.ne.s32.totalorder %s63_s30, %s2506_s14  ;;  %p2512_p7 = scmp.lt.s32.totalorder %s2506_s14, %s2506_s14 }
  0x13   :  { %p2513_p8 = por %p2512_p7, %p2511_p6 }
  0x15   :  { %p2514_p9 = pnand %p2513_p8, %p2507_p5 }
  0x17   :  { %2517 = shalt.err (!%p2514_p9)
}
  0x18   :  { %68 = dma.hbm_to_vmem [thread:$0]  %s3014_s4, 512, %s63_s30, [#allocation11], %s2630_s10, %s2630_s10, %s2631_s11  }
  0x19   :  { %s2632_s17 = smov [#allocation4]   ;;  %s2633_s19 = smov [#allocation9]  }
  0x1a   :  { %s24_s18 = sshll.u32 %s2632_s17, 4  ;;  %s48_s20 = sshll.u32 %s2633_s19, 4  ;;  %s25_s18 = int_to_ptr.vmem [resolvable:$true] %s24_s18  ;;  %s49_s20 = int_to_ptr.vmem [resolvable:$true] %s48_s20 }
  0x1b   :  { %s2526_s1 = scalar_lea.vmem %s25_s18, 256  ;;  %p2531_p11 = scmp.lt.s32.totalorder %s25_s18, %s25_s18 }
  0x1c   :  { %p2527_p10 = scmp.ne.s32.totalorder %s25_s18, %s2526_s1  ;;  %p2532_p12 = scmp.lt.s32.totalorder %s2526_s1, %s2526_s1 }
  0x1e   :  { %p2533_p13 = por %p2532_p12, %p2531_p11 }
  0x20   :  { %p2534_p0 = pnand %p2533_p13, %p2527_p10 }
  0x22   :  { %2537 = shalt.err (!%p2534_p0)
}
  0x23   :  { %30 = dma.hbm_to_vmem [thread:$0]  %s3010_s0, 256, %s25_s18, [#allocation5], %s2630_s10, %s2630_s10, %s2631_s11  }
  0x24   :  { %s2546_s4 = scalar_lea.vmem %s49_s20, 512  ;;  %p2551_p2 = scmp.lt.s32.totalorder %s49_s20, %s49_s20 }
  0x25   :  { %p2547_p1 = scmp.ne.s32.totalorder %s49_s20, %s2546_s4  ;;  %p2552_p3 = scmp.lt.s32.totalorder %s2546_s4, %s2546_s4 }
  0x27   :  { %p2553_p4 = por %p2552_p3, %p2551_p2 }
  0x29   :  { %p2554_p5 = pnand %p2553_p4, %p2547_p1 }
  0x2b   :  { %2557 = shalt.err (!%p2554_p5)
}
  0x2c   :  { %54 = dma.hbm_to_vmem [thread:$0]  %s3012_s2, 512, %s49_s20, [#allocation8], %s2630_s10, %s2630_s10, %s2631_s11  }
  0x2d   :  { %s2634_s25 = smov [#allocation12]  }
  0x2e   :  { %s74_s26 = sshll.u32 %s2634_s25, 4  ;;  %s75_s26 = int_to_ptr.vmem [resolvable:$true] %s74_s26 }
  0x2f   :  { %s2566_s27 = scalar_lea.vmem %s75_s26, 512  ;;  %p2571_p7 = scmp.lt.s32.totalorder %s75_s26, %s75_s26 }
  0x30   :  { %p2567_p6 = scmp.ne.s32.totalorder %s75_s26, %s2566_s27  ;;  %p2572_p8 = scmp.lt.s32.totalorder %s2566_s27, %s2566_s27 }
  0x32   :  { %p2573_p9 = por %p2572_p8, %p2571_p7 }
  0x34   :  { %p2574_p10 = pnand %p2573_p9, %p2567_p6 }
  0x36   :  { %2577 = shalt.err (!%p2574_p10)
}
  0x37   :  { %80 = dma.hbm_to_vmem [thread:$0]  %s3015_s5, 512, %s75_s26, [#allocation11], %s2630_s10, %s2630_s10, %s2631_s11  }
  0x38   :  { %2618 = dma.done.wait [#allocation5], 256  }
  0x39   :  { %2619 = vsyncadd [#allocation5], 4294967040 }
  0x3a   :  { %2620 = dma.done.wait [#allocation8], 1024  }
  0x3b   :  { %2621 = vsyncadd [#allocation8], 4294966272 }
  0x3c   :  { %2622 = dma.done.wait [#allocation11], 1024  }
  0x3d   :  { %2623 = vsyncadd [#allocation11], 4294966272  ;;  %v2635_v0 = vmov 0.0   ;;  %vm2636_vm0 = vmmov 0   ;;  %vm111_vm1 = vcmask 261120   ;;  %v103_v1 = vld [vmem:[#allocation7 + $0x18] sm:$0xff] }
  0x3e   :  { %2148 = vmatprep.subr.mxu1 %v2635_v0  ;;  %2156 = vmatprep.mubr.msk.f32.mxu1 %vm2636_vm0, %v2635_v0  ;;  %v102_v2 = vld [vmem:[#allocation7 + $0x10] sm:$0xff]  ;;  %v101_v4 = vld [vmem:[#allocation7 + $0x8] sm:$0xff]  ;;  %v2722_v5 = vld [vmem:[#allocation9 + $0x18] sm:$0xff]  ;;  %s2637_s29 = smov 64   ;;  %vm302_vm2 = vcmask 254976   ;;  %s2640_s10 = smov [#allocation14]  }
  0x3f   :  { %2137 = vmatprep.subr.mxu0 %v103_v1  ;;  %v98_v3 = vld [vmem:[#allocation4] sm:$0xff]  ;;  %2149 = vmatpush3.msra.mxu1 %v2722_v5  ;;  %v100_v7 = vld [vmem:[#allocation7] sm:$0xff]  ;;  %v2728_v8 = vld [vmem:[#allocation9 + $0x8] sm:$0xff]  ;;  %s1991_s11 = sshll.u32 %s2640_s10, 4  ;;  %s1992_s11 = int_to_ptr.vmem [resolvable:$true] %s1991_s11 }
  0x40   :  { %2138 = vmatpush3.msra.mxu0 %v103_v1  ;;  %2145 = vmatprep.mubr.msk.f32.mxu0 %vm111_vm1, %v98_v3  ;;  %v2724_v6 = vld [vmem:[#allocation9 + $0x10] sm:$0xff]  ;;  %v99_v9 = vld [vmem:[#allocation4 + $0x8] sm:$0xff]  ;;  %v2732_v10 = vld [vmem:[#allocation9] sm:$0xff]  ;;  %s2578_s12 = scalar_lea.vmem %s1992_s11, 64  ;;  %p2583_p12 = scmp.lt.s32.totalorder %s1992_s11, %s1992_s11 }
  0x41   :  { %2139 = vmatprep.subr.mxu0 %v102_v2  ;;  %2150 = vmatprep.subr.mxu1 %v2635_v0  ;;  %v2009_v11 = vld [vmem:[%s3013_s3] ss:$0 sm:$0xff]  ;;  %s2638_s3 = smov 32   ;;  %p2579_p11 = scmp.ne.s32.totalorder %s1992_s11, %s2578_s12 }
  0x42   :  { %2140 = vmatpush3.msra.mxu0 %v102_v2  ;;  %2151 = vmatpush3.msra.mxu1 %v2724_v6  ;;  %p2584_p13 = scmp.lt.s32.totalorder %s2578_s12, %s2578_s12 }
  0x43   :  { %2141 = vmatprep.subr.mxu0 %v101_v4  ;;  %2152 = vmatprep.subr.mxu1 %v2635_v0 }
  0x44   :  { %2142 = vmatpush3.msra.mxu0 %v101_v4  ;;  %2153 = vmatpush3.msra.mxu1 %v2728_v8  ;;  %p2585_p0 = por %p2584_p13, %p2583_p12 }
  0x45   :  { %2143 = vmatprep.subr.mxu0 %v100_v7  ;;  %2154 = vmatprep.subr.mxu1 %v2635_v0 }
  0x46   :  { %2144 = vmatpush3.msra.mxu0 %v100_v7  ;;  %2155 = vmatpush3.msra.mxu1 %v2732_v10  ;;  %p2586_p1 = pnand %p2585_p0, %p2579_p11 }
  0x47   :  { %2146 = vmatmul.mubr.msk.f32.vlgmr.msra.gmra.mxu0 %vm111_vm1, %v99_v9  ;;  %2157 = vmatmul.mubr.f32.vlgmr.msra.gmra.mxu1 %v2635_v0 }
  0x48   :  { %2159 = vmatprep.subr.mxu0 %v2635_v0  ;;  %2167 = vmatprep.mubr.msk.f32.mxu0 %vm2636_vm0, %v2635_v0 }
  0x49   :  { %2160 = vmatpush3.msra.mxu0 %v2722_v5  ;;  %2170 = vmatprep.subr.mxu1 %v2635_v0 }
  0x4a   :  { %2161 = vmatprep.subr.mxu0 %v2635_v0  ;;  %2171 = vmatpush3.msra.mxu1 %v2722_v5 }
  0x4b   :  { %2162 = vmatpush3.msra.mxu0 %v2724_v6  ;;  %2172 = vmatprep.subr.mxu1 %v2635_v0 }
  0x4c   :  { %2163 = vmatprep.subr.mxu0 %v2635_v0  ;;  %2173 = vmatpush3.msra.mxu1 %v2724_v6 }
  0x4d   :  { %2164 = vmatpush3.msra.mxu0 %v2728_v8  ;;  %2174 = vmatprep.subr.mxu1 %v2635_v0 }
  0x4e   :  { %2165 = vmatprep.subr.mxu0 %v2635_v0  ;;  %2175 = vmatpush3.msra.mxu1 %v2728_v8 }
  0x4f   :  { %2166 = vmatpush3.msra.mxu0 %v2732_v10  ;;  %2176 = vmatprep.subr.mxu1 %v2635_v0 }
  0x50   :  { %2178 = vmatprep.mubr.msk.f32.mxu1 %vm2636_vm0, %v2635_v0  ;;  %2177 = vmatpush3.msra.mxu1 %v2732_v10 }
  0x51   :  { %2181 = vmatprep.subr.mxu0 %v2635_v0  ;;  %2192 = vmatprep.subr.mxu1 %v2635_v0 }
 0x107   :  { %v2147_v12 = vpop.f32.mrf.mxu0  ;;  %v269_v14 = vpop.f32.mrf.mxu1 }
 0x108   :  { %v190_v13 = vadd.f32 %v2147_v12, %v2009_v11 }
 0x109   :  { %v184_v15 = vpop.f32.mrf.mxu0  ;;  %v2158_v17 = vpop.f32.mrf.mxu1 }
 0x10a   :  { %194 = vst [vmem:[#allocation2 + $0x8] sm:$0xff] %v190_v13  ;;  %v185_v16 = vadd.f32 %v2009_v11, %v184_v15 }
 0x10c   :  { %193 = vst [vmem:[#allocation2] sm:$0xff] %v185_v16 }
 0x113   :  { %v195_v18 = vld [vmem:[#allocation2] sm:$0x3]  ;;  %v304_v34 = vld [vmem:[#allocation2 + $0x2] sm:$0x3]  ;;  %v411_v52 = vld [vmem:[#allocation2 + $0x4] sm:$0x3] }
 0x114   :  { %v273_v19 = vadd.f32 %v269_v14, %v195_v18  ;;  %v518_v11 = vld [vmem:[#allocation2 + $0x6] sm:$0x3] }
 0x116   :  { %2350 = vtanh.f32 %v273_v19  ;;  %v2012_v21 = vmul.f32 -1.442695, %v273_v19 }
 0x118   :  { %2352 = vpow2.f32 %v2012_v21 }
 0x123   :  { %v2351_v20 = vpop.eup %2350 }
 0x124   :  { %283 = vrot.lane.b32.xlu0 %v2351_v20, %s2637_s29 }
 0x125   :  { %v2353_v22 = vpop.eup %2352 }
 0x126   :  { %v277_v23 = vadd.f32 1.0, %v2353_v22 }
 0x128   :  { %2354 = vrcp.f32 %v277_v23 }
 0x135   :  { %v2355_v24 = vpop.eup %2354 }
 0x136   :  { %v281_v27 = vmul.f32 0.0, %v2355_v24 }
 0x196   :  { %v284_v25 = vpop.permute.xlu0 %283 }
 0x197   :  { %v286_v26 = vmul.f32 %v2355_v24, %v284_v25 }
 0x199   :  { %288 = vrot.lane.b32.xlu0 %v286_v26, %s2638_s3 }
 0x20b   :  { %v289_v28 = vpop.permute.xlu0 %288 }
 0x20c   :  { %v291_v29 = vadd.f32 %v289_v28, %v281_v27 }
 0x20e   :  { %2356 = vtanh.f32 %v291_v29 }
 0x21b   :  { %v2357_v30 = vpop.eup %2356 }
 0x21c   :  { %294 = vrot.lane.b32.xlu1 %v2357_v30, %s2637_s29 }
 0x28e   :  { %v295_v31 = vpop.permute.xlu1 %294 }
 0x28f   :  { %v297_v32 = vmul.f32 %v2355_v24, %v295_v31 }
 0x291   :  { %299 = vrot.lane.b32.xlu1 %v297_v32, %s2638_s3 }
 0x303   :  { %v300_v33 = vpop.permute.xlu1 %299 }
 0x304   :  { %303 = vst.msk [vmem:[#allocation3] sm:$0x3] %vm302_vm2, %v300_v33  ;;  %2168 = vmatmul.mubr.msk.f32.vlgmr.msra.gmra.mxu0 %vm111_vm1, %v300_v33 }
 0x305   :  { %2182 = vmatpush3.msra.mxu0 %v2722_v5  ;;  %2189 = vmatprep.mubr.msk.f32.mxu0 %vm2636_vm0, %v2635_v0 }
 0x306   :  { %2183 = vmatprep.subr.mxu0 %v2635_v0 }
 0x307   :  { %2184 = vmatpush3.msra.mxu0 %v2724_v6 }
 0x308   :  { %2185 = vmatprep.subr.mxu0 %v2635_v0 }
 0x309   :  { %2186 = vmatpush3.msra.mxu0 %v2728_v8 }
 0x30a   :  { %2187 = vmatprep.subr.mxu0 %v2635_v0 }
 0x30b   :  { %2188 = vmatpush3.msra.mxu0 %v2732_v10 }
 0x30c   :  { %2203 = vmatprep.subr.mxu0 %v2635_v0 }
 0x3c4   :  { %v377_v35 = vpop.f32.mrf.mxu0 }
 0x3c5   :  { %v381_v36 = vadd.f32 %v377_v35, %v304_v34 }
 0x3c6   :  { %v2169_v37 = vpop.f32.mrf.mxu0 }
 0x3c7   :  { %2358 = vtanh.f32 %v381_v36  ;;  %v2014_v39 = vmul.f32 -1.442695, %v381_v36 }
 0x3c9   :  { %2360 = vpow2.f32 %v2014_v39 }
 0x3d4   :  { %v2359_v38 = vpop.eup %2358 }
 0x3d5   :  { %391 = vrot.lane.b32.xlu0 %v2359_v38, %s2637_s29 }
 0x3d6   :  { %v2361_v40 = vpop.eup %2360 }
 0x3d7   :  { %v385_v41 = vadd.f32 1.0, %v2361_v40 }
 0x3d9   :  { %2362 = vrcp.f32 %v385_v41 }
 0x3e6   :  { %v2363_v42 = vpop.eup %2362 }
 0x3e7   :  { %v389_v45 = vmul.f32 %v2363_v42, %v291_v29  ;;  %v625_v29 = vld [vmem:[#allocation2 + $0x8] sm:$0x3] }
 0x447   :  { %v392_v43 = vpop.permute.xlu0 %391 }
 0x448   :  { %v394_v44 = vmul.f32 %v2363_v42, %v392_v43 }
 0x44a   :  { %396 = vrot.lane.b32.xlu1 %v394_v44, %s2638_s3 }
 0x4bc   :  { %v397_v46 = vpop.permute.xlu1 %396 }
 0x4bd   :  { %v399_v47 = vadd.f32 %v397_v46, %v389_v45 }
 0x4bf   :  { %2364 = vtanh.f32 %v399_v47 }
 0x4cc   :  { %v2365_v48 = vpop.eup %2364 }
 0x4cd   :  { %402 = vrot.lane.b32.xlu0 %v2365_v48, %s2637_s29 }
 0x53f   :  { %v403_v49 = vpop.permute.xlu0 %402 }
 0x540   :  { %v405_v50 = vmul.f32 %v2363_v42, %v403_v49 }
 0x542   :  { %407 = vrot.lane.b32.xlu1 %v405_v50, %s2638_s3 }
 0x5b4   :  { %v408_v51 = vpop.permute.xlu1 %407 }
 0x5b5   :  { %410 = vst.msk [vmem:[#allocation3 + $0x2] sm:$0x3] %vm302_vm2, %v408_v51  ;;  %2179 = vmatmul.mubr.msk.f32.vlgmr.msra.gmra.mxu1 %vm111_vm1, %v408_v51 }
 0x5b6   :  { %2193 = vmatpush3.msra.mxu1 %v2722_v5  ;;  %2200 = vmatprep.mubr.msk.f32.mxu1 %vm2636_vm0, %v2635_v0 }
 0x5b7   :  { %2194 = vmatprep.subr.mxu1 %v2635_v0 }
 0x5b8   :  { %2195 = vmatpush3.msra.mxu1 %v2724_v6 }
 0x5b9   :  { %2196 = vmatprep.subr.mxu1 %v2635_v0 }
 0x5ba   :  { %2197 = vmatpush3.msra.mxu1 %v2728_v8 }
 0x5bb   :  { %2198 = vmatprep.subr.mxu1 %v2635_v0 }
 0x5bc   :  { %2199 = vmatpush3.msra.mxu1 %v2732_v10 }
 0x5bd   :  { %2214 = vmatprep.subr.mxu1 %v2635_v0 }
 0x675   :  { %v484_v53 = vpop.f32.mrf.mxu1 }
 0x676   :  { %v488_v54 = vadd.f32 %v484_v53, %v411_v52 }
 0x677   :  { %v2180_v55 = vpop.f32.mrf.mxu1 }
 0x678   :  { %2366 = vtanh.f32 %v488_v54  ;;  %v2016_v57 = vmul.f32 -1.442695, %v488_v54 }
 0x67a   :  { %2368 = vpow2.f32 %v2016_v57 }
 0x685   :  { %v2367_v56 = vpop.eup %2366 }
 0x686   :  { %498 = vrot.lane.b32.xlu0 %v2367_v56, %s2637_s29 }
 0x687   :  { %v2369_v58 = vpop.eup %2368 }
 0x688   :  { %v492_v59 = vadd.f32 1.0, %v2369_v58 }
 0x68a   :  { %2370 = vrcp.f32 %v492_v59 }
 0x697   :  { %v2371_v60 = vpop.eup %2370 }
 0x698   :  { %v496_v63 = vmul.f32 %v2371_v60, %v399_v47  ;;  %v732_v47 = vld [vmem:[#allocation2 + $0xa] sm:$0x3] }
 0x6f8   :  { %v499_v61 = vpop.permute.xlu0 %498 }
 0x6f9   :  { %v501_v62 = vmul.f32 %v2371_v60, %v499_v61 }
 0x6fb   :  { %503 = vrot.lane.b32.xlu1 %v501_v62, %s2638_s3  ;;  %v839_v62 = vld [vmem:[#allocation2 + $0xc] sm:$0x3] }
 0x76d   :  { %v504_v1 = vpop.permute.xlu1 %503 }
 0x76e   :  { %v506_v2 = vadd.f32 %v504_v1, %v496_v63 }
 0x770   :  { %2372 = vtanh.f32 %v506_v2 }
 0x77d   :  { %v2373_v3 = vpop.eup %2372 }
 0x77e   :  { %509 = vrot.lane.b32.xlu0 %v2373_v3, %s2637_s29 }
 0x7f0   :  { %v510_v4 = vpop.permute.xlu0 %509 }
 0x7f1   :  { %v512_v7 = vmul.f32 %v2371_v60, %v510_v4 }
 0x7f3   :  { %514 = vrot.lane.b32.xlu1 %v512_v7, %s2638_s3 }
 0x865   :  { %v515_v9 = vpop.permute.xlu1 %514 }
 0x866   :  { %517 = vst.msk [vmem:[#allocation3 + $0x4] sm:$0x3] %vm302_vm2, %v515_v9  ;;  %2190 = vmatmul.mubr.msk.f32.vlgmr.msra.gmra.mxu0 %vm111_vm1, %v515_v9 }
 0x867   :  { %2204 = vmatpush3.msra.mxu0 %v2722_v5  ;;  %2211 = vmatprep.mubr.msk.f32.mxu0 %vm2636_vm0, %v2635_v0 }
 0x868   :  { %2205 = vmatprep.subr.mxu0 %v2635_v0 }
 0x869   :  { %2206 = vmatpush3.msra.mxu0 %v2724_v6 }
 0x86a   :  { %2207 = vmatprep.subr.mxu0 %v2635_v0 }
 0x86b   :  { %2208 = vmatpush3.msra.mxu0 %v2728_v8 }
 0x86c   :  { %2209 = vmatprep.subr.mxu0 %v2635_v0 }
 0x86d   :  { %2210 = vmatpush3.msra.mxu0 %v2732_v10 }
 0x86e   :  { %2225 = vmatprep.subr.mxu0 %v2635_v0 }
 0x926   :  { %v591_v12 = vpop.f32.mrf.mxu0 }
 0x927   :  { %v595_v13 = vadd.f32 %v591_v12, %v518_v11 }
 0x928   :  { %v2191_v14 = vpop.f32.mrf.mxu0 }
 0x929   :  { %2374 = vtanh.f32 %v595_v13  ;;  %v2018_v16 = vmul.f32 -1.442695, %v595_v13 }
 0x92b   :  { %2376 = vpow2.f32 %v2018_v16 }
 0x936   :  { %v2375_v15 = vpop.eup %2374 }
 0x937   :  { %605 = vrot.lane.b32.xlu0 %v2375_v15, %s2637_s29 }
 0x938   :  { %v2377_v17 = vpop.eup %2376 }
 0x939   :  { %v599_v18 = vadd.f32 1.0, %v2377_v17 }
 0x93b   :  { %2378 = vrcp.f32 %v599_v18 }
 0x948   :  { %v2379_v19 = vpop.eup %2378 }
 0x949   :  { %v603_v22 = vmul.f32 %v2379_v19, %v506_v2 }
 0x9a9   :  { %v606_v20 = vpop.permute.xlu0 %605 }
 0x9aa   :  { %v608_v21 = vmul.f32 %v2379_v19, %v606_v20 }
 0x9ac   :  { %610 = vrot.lane.b32.xlu1 %v608_v21, %s2638_s3  ;;  %v946_v21 = vld [vmem:[#allocation2 + $0xe] sm:$0x3] }
 0xa1e   :  { %v611_v23 = vpop.permute.xlu1 %610 }
 0xa1f   :  { %v613_v24 = vadd.f32 %v611_v23, %v603_v22 }
 0xa21   :  { %2380 = vtanh.f32 %v613_v24 }
 0xa2e   :  { %v2381_v25 = vpop.eup %2380 }
 0xa2f   :  { %616 = vrot.lane.b32.xlu0 %v2381_v25, %s2637_s29 }
 0xaa1   :  { %v617_v26 = vpop.permute.xlu0 %616 }
 0xaa2   :  { %v619_v27 = vmul.f32 %v2379_v19, %v617_v26 }
 0xaa4   :  { %621 = vrot.lane.b32.xlu1 %v619_v27, %s2638_s3 }
 0xb16   :  { %v622_v28 = vpop.permute.xlu1 %621 }
 0xb17   :  { %624 = vst.msk [vmem:[#allocation3 + $0x6] sm:$0x3] %vm302_vm2, %v622_v28  ;;  %2201 = vmatmul.mubr.msk.f32.vlgmr.msra.gmra.mxu1 %vm111_vm1, %v622_v28 }
 0xb18   :  { %2215 = vmatpush3.msra.mxu1 %v2722_v5  ;;  %2222 = vmatprep.mubr.msk.f32.mxu1 %vm2636_vm0, %v2635_v0 }
 0xb19   :  { %2216 = vmatprep.subr.mxu1 %v2635_v0 }
 0xb1a   :  { %2217 = vmatpush3.msra.mxu1 %v2724_v6 }
 0xb1b   :  { %2218 = vmatprep.subr.mxu1 %v2635_v0 }
 0xb1c   :  { %2219 = vmatpush3.msra.mxu1 %v2728_v8 }
 0xb1d   :  { %2220 = vmatprep.subr.mxu1 %v2635_v0 }
 0xb1e   :  { %2221 = vmatpush3.msra.mxu1 %v2732_v10  ;;  %v1059_v61 = vld [vmem:[#allocation3] sm:$0xff] }
 0xbd7   :  { %v698_v30 = vpop.f32.mrf.mxu1 }
 0xbd8   :  { %v702_v31 = vadd.f32 %v698_v30, %v625_v29 }
 0xbd9   :  { %v2202_v32 = vpop.f32.mrf.mxu1 }
 0xbda   :  { %2382 = vtanh.f32 %v702_v31  ;;  %v2020_v34 = vmul.f32 -1.442695, %v702_v31 }
 0xbdc   :  { %2384 = vpow2.f32 %v2020_v34 }
 0xbe7   :  { %v2383_v33 = vpop.eup %2382 }
 0xbe8   :  { %712 = vrot.lane.b32.xlu0 %v2383_v33, %s2637_s29 }
 0xbe9   :  { %v2385_v35 = vpop.eup %2384 }
 0xbea   :  { %v706_v36 = vadd.f32 1.0, %v2385_v35 }
 0xbec   :  { %2386 = vrcp.f32 %v706_v36  ;;  %v1064_v36 = vld [vmem:[#allocation10 + $0x18] sm:$0xff] }
 0xbed   :  { %2236 = vmatprep.subr.mxu1 %v1064_v36 }
 0xbf9   :  { %v2387_v37 = vpop.eup %2386 }
 0xbfa   :  { %v710_v40 = vmul.f32 %v2387_v37, %v613_v24 }
 0xc5a   :  { %v713_v38 = vpop.permute.xlu0 %712 }
 0xc5b   :  { %v715_v39 = vmul.f32 %v2387_v37, %v713_v38  ;;  %v1062_v38 = vld [vmem:[#allocation10 + $0x8] sm:$0xff] }
 0xc5d   :  { %717 = vrot.lane.b32.xlu1 %v715_v39, %s2638_s3  ;;  %v1061_v39 = vld [vmem:[#allocation10] sm:$0xff] }
 0xccf   :  { %v718_v41 = vpop.permute.xlu1 %717 }
 0xcd0   :  { %v720_v42 = vadd.f32 %v718_v41, %v710_v40  ;;  %v2864_v40 = vld [vmem:[#allocation12 + $0x18] sm:$0xff]  ;;  %v2866_v41 = vld [vmem:[#allocation12 + $0x10] sm:$0xff] }
 0xcd2   :  { %2388 = vtanh.f32 %v720_v42 }
 0xcdf   :  { %v2389_v43 = vpop.eup %2388 }
 0xce0   :  { %723 = vrot.lane.b32.xlu0 %v2389_v43, %s2637_s29  ;;  %v2871_v43 = vld [vmem:[#allocation12 + $0x8] sm:$0xff] }
 0xd52   :  { %v724_v44 = vpop.permute.xlu0 %723 }
 0xd53   :  { %v726_v45 = vmul.f32 %v2387_v37, %v724_v44  ;;  %v1063_v37 = vld [vmem:[#allocation10 + $0x10] sm:$0xff] }
 0xd55   :  { %728 = vrot.lane.b32.xlu1 %v726_v45, %s2638_s3  ;;  %v2875_v45 = vld [vmem:[#allocation12] sm:$0xff] }
 0xdc7   :  { %v729_v46 = vpop.permute.xlu1 %728 }
 0xdc8   :  { %731 = vst.msk [vmem:[#allocation3 + $0x8] sm:$0x3] %vm302_vm2, %v729_v46  ;;  %2212 = vmatmul.mubr.msk.f32.vlgmr.msra.gmra.mxu0 %vm111_vm1, %v729_v46 }
 0xdc9   :  { %2226 = vmatpush3.msra.mxu0 %v2722_v5  ;;  %2233 = vmatprep.mubr.msk.f32.mxu0 %vm2636_vm0, %v2635_v0 }
 0xdca   :  { %2227 = vmatprep.subr.mxu0 %v2635_v0 }
 0xdcb   :  { %2228 = vmatpush3.msra.mxu0 %v2724_v6 }
 0xdcc   :  { %2229 = vmatprep.subr.mxu0 %v2635_v0 }
 0xdcd   :  { %2230 = vmatpush3.msra.mxu0 %v2728_v8 }
 0xdce   :  { %2231 = vmatprep.subr.mxu0 %v2635_v0 }
 0xdcf   :  { %2232 = vmatpush3.msra.mxu0 %v2732_v10 }
 0xdd0   :  { %2247 = vmatprep.subr.mxu0 %v2635_v0 }
 0xe88   :  { %v805_v48 = vpop.f32.mrf.mxu0 }
 0xe89   :  { %v809_v5 = vadd.f32 %v805_v48, %v732_v47 }
 0xe8a   :  { %v2213_v49 = vpop.f32.mrf.mxu0 }
 0xe8b   :  { %2390 = vtanh.f32 %v809_v5  ;;  %v2022_v51 = vmul.f32 -1.442695, %v809_v5  ;;  %v2027_v49 = vld [vmem:[%s3016_s6] ss:$0 sm:$0xff]  ;;  %s2639_s6 = smov 96  }
 0xe8d   :  { %2392 = vpow2.f32 %v2022_v51 }
 0xe98   :  { %v2391_v50 = vpop.eup %2390 }
 0xe99   :  { %819 = vrot.lane.b32.xlu0 %v2391_v50, %s2637_s29 }
 0xe9a   :  { %v2393_v6 = vpop.eup %2392 }
 0xe9b   :  { %v813_v52 = vadd.f32 1.0, %v2393_v6 }
 0xe9d   :  { %2394 = vrcp.f32 %v813_v52 }
 0xeaa   :  { %v2395_v8 = vpop.eup %2394 }
 0xeab   :  { %v817_v10 = vmul.f32 %v2395_v8, %v720_v42 }
 0xf0b   :  { %v820_v53 = vpop.permute.xlu0 %819 }
 0xf0c   :  { %v822_v54 = vmul.f32 %v2395_v8, %v820_v53 }
 0xf0e   :  { %824 = vrot.lane.b32.xlu1 %v822_v54, %s2638_s3 }
 0xf80   :  { %v825_v55 = vpop.permute.xlu1 %824 }
 0xf81   :  { %v827_v56 = vadd.f32 %v825_v55, %v817_v10 }
 0xf83   :  { %2396 = vtanh.f32 %v827_v56 }
 0xf90   :  { %v2397_v57 = vpop.eup %2396 }
 0xf91   :  { %830 = vrot.lane.b32.xlu0 %v2397_v57, %s2637_s29 }
0x1003   :  { %v831_v58 = vpop.permute.xlu0 %830 }
0x1004   :  { %v833_v59 = vmul.f32 %v2395_v8, %v831_v58 }
0x1006   :  { %835 = vrot.lane.b32.xlu1 %v833_v59, %s2638_s3 }
0x1078   :  { %v836_v60 = vpop.permute.xlu1 %835 }
0x1079   :  { %838 = vst.msk [vmem:[#allocation3 + $0xa] sm:$0x3] %vm302_vm2, %v836_v60  ;;  %2223 = vmatmul.mubr.msk.f32.vlgmr.msra.gmra.mxu1 %vm111_vm1, %v836_v60 }
0x107a   :  { %2244 = vmatprep.mubr.msk.f32.mxu1 %vm111_vm1, %v1059_v61  ;;  %2237 = vmatpush3.msra.mxu1 %v1064_v36 }
0x107b   :  { %2238 = vmatprep.subr.mxu1 %v1063_v37 }
0x107c   :  { %2239 = vmatpush3.msra.mxu1 %v1063_v37 }
0x107d   :  { %2240 = vmatprep.subr.mxu1 %v1062_v38 }
0x107e   :  { %2241 = vmatpush3.msra.mxu1 %v1062_v38 }
0x107f   :  { %2242 = vmatprep.subr.mxu1 %v1061_v39 }
0x1080   :  { %2243 = vmatpush3.msra.mxu1 %v1061_v39 }
0x1081   :  { %2258 = vmatprep.subr.mxu1 %v2635_v0 }
0x1139   :  { %v912_v63 = vpop.f32.mrf.mxu1 }
0x113a   :  { %v916_v1 = vadd.f32 %v912_v63, %v839_v62 }
0x113b   :  { %v2224_v2 = vpop.f32.mrf.mxu1 }
0x113c   :  { %2398 = vtanh.f32 %v916_v1  ;;  %v2024_v4 = vmul.f32 -1.442695, %v916_v1 }
0x113e   :  { %2400 = vpow2.f32 %v2024_v4 }
0x1149   :  { %v2399_v3 = vpop.eup %2398 }
0x114a   :  { %926 = vrot.lane.b32.xlu0 %v2399_v3, %s2637_s29 }
0x114b   :  { %v2401_v7 = vpop.eup %2400 }
0x114c   :  { %v920_v9 = vadd.f32 1.0, %v2401_v7 }
0x114e   :  { %2402 = vrcp.f32 %v920_v9 }
0x115b   :  { %v2403_v11 = vpop.eup %2402 }
0x115c   :  { %v924_v14 = vmul.f32 %v2403_v11, %v827_v56 }
0x11bc   :  { %v927_v12 = vpop.permute.xlu0 %926 }
0x11bd   :  { %v929_v13 = vmul.f32 %v2403_v11, %v927_v12 }
0x11bf   :  { %931 = vrot.lane.b32.xlu1 %v929_v13, %s2638_s3 }
0x1231   :  { %v932_v15 = vpop.permute.xlu1 %931 }
0x1232   :  { %v934_v16 = vadd.f32 %v932_v15, %v924_v14 }
0x1234   :  { %2404 = vtanh.f32 %v934_v16 }
0x1241   :  { %v2405_v17 = vpop.eup %2404 }
0x1242   :  { %937 = vrot.lane.b32.xlu0 %v2405_v17, %s2637_s29 }
0x12b4   :  { %v938_v18 = vpop.permute.xlu0 %937 }
0x12b5   :  { %v940_v19 = vmul.f32 %v2403_v11, %v938_v18 }
0x12b7   :  { %942 = vrot.lane.b32.xlu1 %v940_v19, %s2638_s3 }
0x1329   :  { %v943_v20 = vpop.permute.xlu1 %942 }
0x132a   :  { %945 = vst.msk [vmem:[#allocation3 + $0xc] sm:$0x3] %vm302_vm2, %v943_v20  ;;  %2234 = vmatmul.mubr.msk.f32.vlgmr.msra.gmra.mxu0 %vm111_vm1, %v943_v20 }
0x132b   :  { %2255 = vmatprep.mubr.msk.f32.mxu0 %vm2636_vm0, %v2635_v0  ;;  %2248 = vmatpush3.msra.mxu0 %v2864_v40 }
0x132c   :  { %2249 = vmatprep.subr.mxu0 %v2635_v0 }
0x132d   :  { %2250 = vmatpush3.msra.mxu0 %v2866_v41 }
0x132e   :  { %2251 = vmatprep.subr.mxu0 %v2635_v0 }
0x132f   :  { %2252 = vmatpush3.msra.mxu0 %v2871_v43 }
0x1330   :  { %2253 = vmatprep.subr.mxu0 %v2635_v0 }
0x1331   :  { %2254 = vmatpush3.msra.mxu0 %v2875_v45 }
0x1332   :  { %2256 = vmatmul.mubr.f32.vlgmr.msra.gmra.mxu0 %v2635_v0  ;;  %2269 = vmatprep.subr.mxu0 %v2635_v0 }
0x1333   :  { %2270 = vmatpush3.msra.mxu0 %v2864_v40  ;;  %2277 = vmatprep.mubr.msk.f32.mxu0 %vm2636_vm0, %v2635_v0 }
0x1334   :  { %2271 = vmatprep.subr.mxu0 %v2635_v0 }
0x1335   :  { %2272 = vmatpush3.msra.mxu0 %v2866_v41 }
0x1336   :  { %2273 = vmatprep.subr.mxu0 %v2635_v0 }
0x1337   :  { %2274 = vmatpush3.msra.mxu0 %v2871_v43 }
0x1338   :  { %2275 = vmatprep.subr.mxu0 %v2635_v0 }
0x1339   :  { %2276 = vmatpush3.msra.mxu0 %v2875_v45 }
0x133a   :  { %2291 = vmatprep.subr.mxu0 %v2635_v0 }
0x13ea   :  { %v1019_v22 = vpop.f32.mrf.mxu0 }
0x13eb   :  { %v1023_v23 = vadd.f32 %v1019_v22, %v946_v21 }
0x13ec   :  { %v2235_v24 = vpop.f32.mrf.mxu0 }
0x13ed   :  { %2406 = vtanh.f32 %v1023_v23  ;;  %v2026_v26 = vmul.f32 -1.442695, %v1023_v23 }
0x13ef   :  { %2408 = vpow2.f32 %v2026_v26 }
0x13f2   :  { %v1226_v48 = vpop.f32.mrf.mxu0 }
0x13f4   :  { %v2257_v5 = vpop.f32.mrf.mxu0 }
0x13fa   :  { %v2407_v25 = vpop.eup %2406 }
0x13fb   :  { %1033 = vrot.lane.b32.xlu0 %v2407_v25, %s2637_s29 }
0x13fc   :  { %v2409_v27 = vpop.eup %2408 }
0x13fd   :  { %v1027_v28 = vadd.f32 1.0, %v2409_v27 }
0x13ff   :  { %2410 = vrcp.f32 %v1027_v28 }
0x140c   :  { %v2411_v29 = vpop.eup %2410 }
0x140d   :  { %v1031_v32 = vmul.f32 %v2411_v29, %v934_v16 }
0x146d   :  { %v1034_v30 = vpop.permute.xlu0 %1033 }
0x146e   :  { %v1036_v31 = vmul.f32 %v2411_v29, %v1034_v30 }
0x1470   :  { %1038 = vrot.lane.b32.xlu1 %v1036_v31, %s2638_s3 }
0x14e2   :  { %v1039_v33 = vpop.permute.xlu1 %1038 }
0x14e3   :  { %v2860_v34 = vadd.f32 %v1039_v33, %v1031_v32 }
0x14e5   :  { %2412 = vtanh.f32 %v2860_v34 }
0x14f2   :  { %v2413_v35 = vpop.eup %2412 }
0x14f3   :  { %1044 = vrot.lane.b32.xlu0 %v2413_v35, %s2637_s29 }
0x1565   :  { %v1045_v42 = vpop.permute.xlu0 %1044 }
0x1566   :  { %v1047_v44 = vmul.f32 %v2411_v29, %v1045_v42 }
0x1568   :  { %1049 = vrot.lane.b32.xlu1 %v1047_v44, %s2638_s3 }
0x15da   :  { %v1050_v46 = vpop.permute.xlu1 %1049 }
0x15db   :  { %1052 = vst.msk [vmem:[#allocation3 + $0xe] sm:$0x3] %vm302_vm2, %v1050_v46  ;;  %1053 = vst.msk [vmem:[#allocation13] sm:$0x3] %vm302_vm2, %v1050_v46 }
0x15e2   :  { %v1060_v47 = vld [vmem:[#allocation3 + $0x8] sm:$0xff] }
0x15e3   :  { %2245 = vmatmul.mubr.msk.f32.vlgmr.msra.gmra.mxu1 %vm111_vm1, %v1060_v47 }
0x15e4   :  { %2259 = vmatpush3.msra.mxu1 %v2864_v40  ;;  %2266 = vmatprep.mubr.msk.f32.mxu1 %vm2636_vm0, %v2635_v0 }
0x15e5   :  { %2260 = vmatprep.subr.mxu1 %v2635_v0 }
0x15e6   :  { %2261 = vmatpush3.msra.mxu1 %v2866_v41 }
0x15e7   :  { %2262 = vmatprep.subr.mxu1 %v2635_v0 }
0x15e8   :  { %2263 = vmatpush3.msra.mxu1 %v2871_v43 }
0x15e9   :  { %2264 = vmatprep.subr.mxu1 %v2635_v0 }
0x15ea   :  { %2265 = vmatpush3.msra.mxu1 %v2875_v45 }
0x15eb   :  { %2280 = vmatprep.subr.mxu1 %v2635_v0 }
0x16a3   :  { %v2246_v50 = vpop.f32.mrf.mxu1 }
0x16a4   :  { %v1150_v51 = vadd.f32 %v2246_v50, %v2027_v49 }
0x16a5   :  { %v1144_v6 = vpop.f32.mrf.mxu1 }
0x16a6   :  { %1154 = vst [vmem:[#allocation2 + $0x8] sm:$0xff] %v1150_v51  ;;  %v1145_v52 = vadd.f32 %v2027_v49, %v1144_v6 }
0x16a8   :  { %1153 = vst [vmem:[#allocation2] sm:$0xff] %v1145_v52 }
0x16af   :  { %v1155_v8 = vld [vmem:[#allocation2] sm:$0x3]  ;;  %v1255_v4 = vld [vmem:[#allocation2 + $0x2] sm:$0x3]  ;;  %v1356_v26 = vld [vmem:[#allocation2 + $0x4] sm:$0x3] }
0x16b0   :  { %v1230_v53 = vadd.f32 %v1226_v48, %v1155_v8  ;;  %v1457_v5 = vld [vmem:[#allocation2 + $0x6] sm:$0x3] }
0x16b2   :  { %2414 = vtanh.f32 %v1230_v53  ;;  %v2030_v10 = vmul.f32 -1.442695, %v1230_v53 }
0x16b4   :  { %2416 = vpow2.f32 %v2030_v10 }
0x16bf   :  { %v2415_v54 = vpop.eup %2414 }
0x16c0   :  { %1240 = vrot.lane.b32.xlu0 %v2415_v54, %s2637_s29 }
0x16c1   :  { %v2417_v55 = vpop.eup %2416 }
0x16c2   :  { %v1234_v56 = vadd.f32 1.0, %v2417_v55 }
0x16c4   :  { %2418 = vrcp.f32 %v1234_v56 }
0x16d1   :  { %v2419_v57 = vpop.eup %2418 }
0x16d2   :  { %v1238_v60 = vmul.f32 0.0, %v2419_v57 }
0x1732   :  { %v1241_v58 = vpop.permute.xlu0 %1240 }
0x1733   :  { %v1243_v59 = vmul.f32 %v2419_v57, %v1241_v58 }
0x1735   :  { %1245 = vrot.lane.b32.xlu1 %v1243_v59, %s2638_s3 }
0x17a7   :  { %v1246_v61 = vpop.permute.xlu1 %1245 }
0x17a8   :  { %v1248_v62 = vadd.f32 %v1246_v61, %v1238_v60 }
0x17aa   :  { %2420 = vtanh.f32 %v1248_v62 }
0x17b7   :  { %v2421_v63 = vpop.eup %2420 }
0x17b8   :  { %1251 = vrot.lane.b32.xlu0 %v2421_v63, %s2637_s29  ;;  %v1558_v63 = vld [vmem:[#allocation2 + $0x8] sm:$0x3] }
0x182a   :  { %v1252_v1 = vpop.permute.xlu0 %1251 }
0x182b   :  { %v1254_v2 = vmul.f32 %v2419_v57, %v1252_v1 }
0x182d   :  { %1257 = vrot.lane.b32.xlu1 %v1254_v2, %s2638_s3 }
0x189f   :  { %v1258_v3 = vpop.permute.xlu1 %1257 }
0x18a0   :  { %2267 = vmatmul.mubr.msk.f32.vlgmr.msra.gmra.mxu1 %vm111_vm1, %v1258_v3 }
0x18a1   :  { %2281 = vmatpush3.msra.mxu1 %v2864_v40  ;;  %2288 = vmatprep.mubr.msk.f32.mxu1 %vm2636_vm0, %v2635_v0 }
0x18a2   :  { %2282 = vmatprep.subr.mxu1 %v2635_v0 }
0x18a3   :  { %2283 = vmatpush3.msra.mxu1 %v2866_v41 }
0x18a4   :  { %2284 = vmatprep.subr.mxu1 %v2635_v0 }
0x18a5   :  { %2285 = vmatpush3.msra.mxu1 %v2871_v43 }
0x18a6   :  { %2286 = vmatprep.subr.mxu1 %v2635_v0 }
0x18a7   :  { %2287 = vmatpush3.msra.mxu1 %v2875_v45 }
0x18a8   :  { %2302 = vmatprep.subr.mxu1 %v2635_v0 }
0x1960   :  { %v1327_v7 = vpop.f32.mrf.mxu1 }
0x1961   :  { %v1331_v9 = vadd.f32 %v1327_v7, %v1255_v4 }
0x1962   :  { %v2268_v11 = vpop.f32.mrf.mxu1 }
0x1963   :  { %2422 = vtanh.f32 %v1331_v9  ;;  %v2032_v13 = vmul.f32 -1.442695, %v1331_v9 }
0x1965   :  { %2424 = vpow2.f32 %v2032_v13 }
0x1970   :  { %v2423_v12 = vpop.eup %2422 }
0x1971   :  { %1341 = vrot.lane.b32.xlu0 %v2423_v12, %s2637_s29 }
0x1972   :  { %v2425_v14 = vpop.eup %2424 }
0x1973   :  { %v1335_v15 = vadd.f32 1.0, %v2425_v14 }
0x1975   :  { %2426 = vrcp.f32 %v1335_v15 }
0x1982   :  { %v2427_v16 = vpop.eup %2426 }
0x1983   :  { %v1339_v19 = vmul.f32 %v2427_v16, %v1248_v62 }
0x19e3   :  { %v1342_v17 = vpop.permute.xlu0 %1341 }
0x19e4   :  { %v1344_v18 = vmul.f32 %v2427_v16, %v1342_v17 }
0x19e6   :  { %1346 = vrot.lane.b32.xlu1 %v1344_v18, %s2638_s3 }
0x1a58   :  { %v1347_v20 = vpop.permute.xlu1 %1346 }
0x1a59   :  { %v1349_v21 = vadd.f32 %v1347_v20, %v1339_v19 }
0x1a5b   :  { %2428 = vtanh.f32 %v1349_v21 }
0x1a68   :  { %v2429_v22 = vpop.eup %2428 }
0x1a69   :  { %1352 = vrot.lane.b32.xlu0 %v2429_v22, %s2637_s29  ;;  %v1659_v22 = vld [vmem:[#allocation2 + $0xa] sm:$0x3] }
0x1adb   :  { %v1353_v23 = vpop.permute.xlu0 %1352 }
0x1adc   :  { %v1355_v24 = vmul.f32 %v2427_v16, %v1353_v23 }
0x1ade   :  { %1358 = vrot.lane.b32.xlu1 %v1355_v24, %s2638_s3 }
0x1b50   :  { %v1359_v25 = vpop.permute.xlu1 %1358 }
0x1b51   :  { %2278 = vmatmul.mubr.msk.f32.vlgmr.msra.gmra.mxu0 %vm111_vm1, %v1359_v25 }
0x1b52   :  { %2292 = vmatpush3.msra.mxu0 %v2864_v40  ;;  %2299 = vmatprep.mubr.msk.f32.mxu0 %vm2636_vm0, %v2635_v0 }
0x1b53   :  { %2293 = vmatprep.subr.mxu0 %v2635_v0 }
0x1b54   :  { %2294 = vmatpush3.msra.mxu0 %v2866_v41 }
0x1b55   :  { %2295 = vmatprep.subr.mxu0 %v2635_v0 }
0x1b56   :  { %2296 = vmatpush3.msra.mxu0 %v2871_v43 }
0x1b57   :  { %2297 = vmatprep.subr.mxu0 %v2635_v0 }
0x1b58   :  { %2298 = vmatpush3.msra.mxu0 %v2875_v45 }
0x1b59   :  { %2313 = vmatprep.subr.mxu0 %v2635_v0 }
0x1c11   :  { %v1428_v27 = vpop.f32.mrf.mxu0 }
0x1c12   :  { %v1432_v28 = vadd.f32 %v1428_v27, %v1356_v26 }
0x1c13   :  { %v2279_v29 = vpop.f32.mrf.mxu0 }
0x1c14   :  { %2430 = vtanh.f32 %v1432_v28  ;;  %v2034_v31 = vmul.f32 -1.442695, %v1432_v28 }
0x1c16   :  { %2432 = vpow2.f32 %v2034_v31 }
0x1c21   :  { %v2431_v30 = vpop.eup %2430 }
0x1c22   :  { %1442 = vrot.lane.b32.xlu0 %v2431_v30, %s2637_s29 }
0x1c23   :  { %v2433_v32 = vpop.eup %2432 }
0x1c24   :  { %v1436_v33 = vadd.f32 1.0, %v2433_v32 }
0x1c26   :  { %2434 = vrcp.f32 %v1436_v33 }
0x1c33   :  { %v2435_v35 = vpop.eup %2434 }
0x1c34   :  { %v1440_v38 = vmul.f32 %v2435_v35, %v1349_v21 }
0x1c94   :  { %v1443_v36 = vpop.permute.xlu0 %1442 }
0x1c95   :  { %v1445_v37 = vmul.f32 %v2435_v35, %v1443_v36  ;;  %v1760_v36 = vld [vmem:[#allocation2 + $0xc] sm:$0x3] }
0x1c97   :  { %1447 = vrot.lane.b32.xlu1 %v1445_v37, %s2638_s3 }
0x1d09   :  { %v1448_v39 = vpop.permute.xlu1 %1447 }
0x1d0a   :  { %v1450_v42 = vadd.f32 %v1448_v39, %v1440_v38 }
0x1d0c   :  { %2436 = vtanh.f32 %v1450_v42 }
0x1d19   :  { %v2437_v44 = vpop.eup %2436 }
0x1d1a   :  { %1453 = vrot.lane.b32.xlu0 %v2437_v44, %s2637_s29 }
0x1d8c   :  { %v1454_v46 = vpop.permute.xlu0 %1453 }
0x1d8d   :  { %v1456_v47 = vmul.f32 %v2435_v35, %v1454_v46 }
0x1d8f   :  { %1459 = vrot.lane.b32.xlu1 %v1456_v47, %s2638_s3 }
0x1e01   :  { %v1460_v48 = vpop.permute.xlu1 %1459 }
0x1e02   :  { %2289 = vmatmul.mubr.msk.f32.vlgmr.msra.gmra.mxu1 %vm111_vm1, %v1460_v48 }
0x1e03   :  { %2303 = vmatpush3.msra.mxu1 %v2864_v40  ;;  %2310 = vmatprep.mubr.msk.f32.mxu1 %vm2636_vm0, %v2635_v0 }
0x1e04   :  { %2304 = vmatprep.subr.mxu1 %v2635_v0 }
0x1e05   :  { %2305 = vmatpush3.msra.mxu1 %v2866_v41 }
0x1e06   :  { %2306 = vmatprep.subr.mxu1 %v2635_v0 }
0x1e07   :  { %2307 = vmatpush3.msra.mxu1 %v2871_v43 }
0x1e08   :  { %2308 = vmatprep.subr.mxu1 %v2635_v0 }
0x1e09   :  { %2309 = vmatpush3.msra.mxu1 %v2875_v45 }
0x1e0a   :  { %2324 = vmatprep.subr.mxu1 %v2635_v0 }
0x1ec2   :  { %v1529_v49 = vpop.f32.mrf.mxu1 }
0x1ec3   :  { %v1533_v50 = vadd.f32 %v1529_v49, %v1457_v5 }
0x1ec4   :  { %v2290_v51 = vpop.f32.mrf.mxu1 }
0x1ec5   :  { %2438 = vtanh.f32 %v1533_v50  ;;  %v2036_v52 = vmul.f32 -1.442695, %v1533_v50 }
0x1ec7   :  { %2440 = vpow2.f32 %v2036_v52 }
0x1ed2   :  { %v2439_v6 = vpop.eup %2438 }
0x1ed3   :  { %1543 = vrot.lane.b32.xlu0 %v2439_v6, %s2637_s29 }
0x1ed4   :  { %v2441_v8 = vpop.eup %2440 }
0x1ed5   :  { %v1537_v53 = vadd.f32 1.0, %v2441_v8 }
0x1ed7   :  { %2442 = vrcp.f32 %v1537_v53 }
0x1ee4   :  { %v2443_v54 = vpop.eup %2442 }
0x1ee5   :  { %v1541_v56 = vmul.f32 %v2443_v54, %v1450_v42 }
0x1f45   :  { %v1544_v10 = vpop.permute.xlu0 %1543 }
0x1f46   :  { %v1546_v55 = vmul.f32 %v2443_v54, %v1544_v10  ;;  %v1861_v10 = vld [vmem:[#allocation2 + $0xe] sm:$0x3] }
0x1f48   :  { %1548 = vrot.lane.b32.xlu1 %v1546_v55, %s2638_s3 }
0x1fba   :  { %v1549_v57 = vpop.permute.xlu1 %1548 }
0x1fbb   :  { %v1551_v58 = vadd.f32 %v1549_v57, %v1541_v56 }
0x1fbd   :  { %2444 = vtanh.f32 %v1551_v58 }
0x1fca   :  { %v2445_v59 = vpop.eup %2444 }
0x1fcb   :  { %1554 = vrot.lane.b32.xlu0 %v2445_v59, %s2637_s29 }
0x203d   :  { %v1555_v60 = vpop.permute.xlu0 %1554 }
0x203e   :  { %v1557_v61 = vmul.f32 %v2443_v54, %v1555_v60 }
0x2040   :  { %1560 = vrot.lane.b32.xlu1 %v1557_v61, %s2638_s3 }
0x20b2   :  { %v1561_v62 = vpop.permute.xlu1 %1560 }
0x20b3   :  { %2300 = vmatmul.mubr.msk.f32.vlgmr.msra.gmra.mxu0 %vm111_vm1, %v1561_v62 }
0x20b4   :  { %2314 = vmatpush3.msra.mxu0 %v2864_v40  ;;  %2321 = vmatprep.mubr.msk.f32.mxu0 %vm2636_vm0, %v2635_v0 }
0x20b5   :  { %2315 = vmatprep.subr.mxu0 %v2635_v0 }
0x20b6   :  { %2316 = vmatpush3.msra.mxu0 %v2866_v41 }
0x20b7   :  { %2317 = vmatprep.subr.mxu0 %v2635_v0 }
0x20b8   :  { %2318 = vmatpush3.msra.mxu0 %v2871_v43 }
0x20b9   :  { %2319 = vmatprep.subr.mxu0 %v2635_v0 }
0x20ba   :  { %2320 = vmatpush3.msra.mxu0 %v2875_v45 }
0x2173   :  { %v1630_v1 = vpop.f32.mrf.mxu0 }
0x2174   :  { %v1634_v2 = vadd.f32 %v1630_v1, %v1558_v63 }
0x2175   :  { %v2301_v3 = vpop.f32.mrf.mxu0 }
0x2176   :  { %2446 = vtanh.f32 %v1634_v2  ;;  %v2038_v7 = vmul.f32 -1.442695, %v1634_v2 }
0x2178   :  { %2448 = vpow2.f32 %v2038_v7 }
0x2183   :  { %v2447_v4 = vpop.eup %2446 }
0x2184   :  { %1644 = vrot.lane.b32.xlu0 %v2447_v4, %s2637_s29 }
0x2185   :  { %v2449_v9 = vpop.eup %2448 }
0x2186   :  { %v1638_v11 = vadd.f32 1.0, %v2449_v9 }
0x2188   :  { %2450 = vrcp.f32 %v1638_v11 }
0x2195   :  { %v2451_v12 = vpop.eup %2450 }
0x2196   :  { %v1642_v15 = vmul.f32 %v2451_v12, %v1551_v58 }
0x21f6   :  { %v1645_v13 = vpop.permute.xlu0 %1644 }
0x21f7   :  { %v1647_v14 = vmul.f32 %v2451_v12, %v1645_v13 }
0x21f9   :  { %1649 = vrot.lane.b32.xlu1 %v1647_v14, %s2638_s3 }
0x226b   :  { %v1650_v16 = vpop.permute.xlu1 %1649 }
0x226c   :  { %v1652_v17 = vadd.f32 %v1650_v16, %v1642_v15 }
0x226e   :  { %2452 = vtanh.f32 %v1652_v17 }
0x227b   :  { %v2453_v18 = vpop.eup %2452 }
0x227c   :  { %1655 = vrot.lane.b32.xlu0 %v2453_v18, %s2637_s29 }
0x22ee   :  { %v1656_v19 = vpop.permute.xlu0 %1655 }
0x22ef   :  { %v1658_v20 = vmul.f32 %v2451_v12, %v1656_v19 }
0x22f1   :  { %1661 = vrot.lane.b32.xlu1 %v1658_v20, %s2638_s3 }
0x2363   :  { %v1662_v21 = vpop.permute.xlu1 %1661 }
0x2364   :  { %2311 = vmatmul.mubr.msk.f32.vlgmr.msra.gmra.mxu1 %vm111_vm1, %v1662_v21 }
0x2365   :  { %2325 = vmatpush3.msra.mxu1 %v2864_v40  ;;  %2332 = vmatprep.mubr.msk.f32.mxu1 %vm2636_vm0, %v2635_v0 }
0x2366   :  { %2326 = vmatprep.subr.mxu1 %v2635_v0 }
0x2367   :  { %2327 = vmatpush3.msra.mxu1 %v2866_v41 }
0x2368   :  { %2328 = vmatprep.subr.mxu1 %v2635_v0 }
0x2369   :  { %2329 = vmatpush3.msra.mxu1 %v2871_v43 }
0x236a   :  { %2330 = vmatprep.subr.mxu1 %v2635_v0 }
0x236b   :  { %2331 = vmatpush3.msra.mxu1 %v2875_v45 }
0x2424   :  { %v1731_v23 = vpop.f32.mrf.mxu1 }
0x2425   :  { %v1735_v24 = vadd.f32 %v1731_v23, %v1659_v22 }
0x2426   :  { %v2312_v25 = vpop.f32.mrf.mxu1 }
0x2427   :  { %2454 = vtanh.f32 %v1735_v24  ;;  %v2040_v26 = vmul.f32 -1.442695, %v1735_v24 }
0x2429   :  { %2456 = vpow2.f32 %v2040_v26 }
0x2434   :  { %v2455_v40 = vpop.eup %2454 }
0x2435   :  { %1745 = vrot.lane.b32.xlu0 %v2455_v40, %s2637_s29 }
0x2436   :  { %v2457_v27 = vpop.eup %2456 }
0x2437   :  { %v1739_v41 = vadd.f32 1.0, %v2457_v27 }
0x2439   :  { %2458 = vrcp.f32 %v1739_v41 }
0x2446   :  { %v2459_v28 = vpop.eup %2458 }
0x2447   :  { %v1743_v0 = vmul.f32 %v2459_v28, %v1652_v17 }
0x24a7   :  { %v1746_v29 = vpop.permute.xlu0 %1745 }
0x24a8   :  { %v1748_v43 = vmul.f32 %v2459_v28, %v1746_v29 }
0x24aa   :  { %1750 = vrot.lane.b32.xlu1 %v1748_v43, %s2638_s3 }
0x251c   :  { %v1751_v45 = vpop.permute.xlu1 %1750 }
0x251d   :  { %v1753_v30 = vadd.f32 %v1751_v45, %v1743_v0 }
0x251f   :  { %2460 = vtanh.f32 %v1753_v30 }
0x252c   :  { %v2461_v31 = vpop.eup %2460 }
0x252d   :  { %1756 = vrot.lane.b32.xlu0 %v2461_v31, %s2637_s29 }
0x259f   :  { %v1757_v32 = vpop.permute.xlu0 %1756 }
0x25a0   :  { %v1759_v33 = vmul.f32 %v2459_v28, %v1757_v32 }
0x25a2   :  { %1762 = vrot.lane.b32.xlu1 %v1759_v33, %s2638_s3 }
0x2614   :  { %v1763_v35 = vpop.permute.xlu1 %1762 }
0x2615   :  { %2322 = vmatmul.mubr.msk.f32.vlgmr.msra.gmra.mxu0 %vm111_vm1, %v1763_v35 }
0x26d5   :  { %v1832_v37 = vpop.f32.mrf.mxu0 }
0x26d6   :  { %v1836_v38 = vadd.f32 %v1832_v37, %v1760_v36 }
0x26d7   :  { %v2323_v39 = vpop.f32.mrf.mxu0 }
0x26d8   :  { %2462 = vtanh.f32 %v1836_v38  ;;  %v2042_v44 = vmul.f32 -1.442695, %v1836_v38 }
0x26da   :  { %2464 = vpow2.f32 %v2042_v44 }
0x26e5   :  { %v2463_v42 = vpop.eup %2462 }
0x26e6   :  { %1846 = vrot.lane.b32.xlu0 %v2463_v42, %s2637_s29 }
0x26e7   :  { %v2465_v46 = vpop.eup %2464 }
0x26e8   :  { %v1840_v47 = vadd.f32 1.0, %v2465_v46 }
0x26ea   :  { %2466 = vrcp.f32 %v1840_v47 }
0x26f7   :  { %v2467_v48 = vpop.eup %2466 }
0x26f8   :  { %v1844_v50 = vmul.f32 %v2467_v48, %v1753_v30 }
0x2758   :  { %v1847_v5 = vpop.permute.xlu0 %1846 }
0x2759   :  { %v1849_v49 = vmul.f32 %v2467_v48, %v1847_v5 }
0x275b   :  { %1851 = vrot.lane.b32.xlu1 %v1849_v49, %s2638_s3 }
0x27cd   :  { %v1852_v51 = vpop.permute.xlu1 %1851 }
0x27ce   :  { %v1854_v6 = vadd.f32 %v1852_v51, %v1844_v50 }
0x27d0   :  { %2468 = vtanh.f32 %v1854_v6 }
0x27dd   :  { %v2469_v52 = vpop.eup %2468 }
0x27de   :  { %1857 = vrot.lane.b32.xlu0 %v2469_v52, %s2637_s29 }
0x2850   :  { %v1858_v8 = vpop.permute.xlu0 %1857 }
0x2851   :  { %v1860_v53 = vmul.f32 %v2467_v48, %v1858_v8 }
0x2853   :  { %1863 = vrot.lane.b32.xlu1 %v1860_v53, %s2638_s3 }
0x28c5   :  { %v1864_v54 = vpop.permute.xlu1 %1863 }
0x28c6   :  { %2333 = vmatmul.mubr.msk.f32.vlgmr.msra.gmra.mxu1 %vm111_vm1, %v1864_v54 }
0x2986   :  { %v1933_v55 = vpop.f32.mrf.mxu1 }
0x2987   :  { %v1937_v56 = vadd.f32 %v1933_v55, %v1861_v10 }
0x2988   :  { %v2334_v57 = vpop.f32.mrf.mxu1 }
0x2989   :  { %2470 = vtanh.f32 %v1937_v56  ;;  %v2044_v59 = vmul.f32 -1.442695, %v1937_v56 }
0x298b   :  { %2472 = vpow2.f32 %v2044_v59 }
0x2996   :  { %v2471_v58 = vpop.eup %2470 }
0x2997   :  { %1947 = vrot.lane.b32.xlu0 %v2471_v58, %s2637_s29 }
0x2998   :  { %v2473_v60 = vpop.eup %2472 }
0x2999   :  { %v1941_v61 = vadd.f32 1.0, %v2473_v60 }
0x299b   :  { %2474 = vrcp.f32 %v1941_v61 }
0x29a8   :  { %v2475_v62 = vpop.eup %2474 }
0x29a9   :  { %v1945_v2 = vmul.f32 %v2475_v62, %v1854_v6 }
0x2a09   :  { %v1948_v63 = vpop.permute.xlu0 %1947 }
0x2a0a   :  { %v1950_v1 = vmul.f32 %v2475_v62, %v1948_v63 }
0x2a0c   :  { %1952 = vrot.lane.b32.xlu1 %v1950_v1, %s2638_s3 }
0x2a10   :  { %1055 = vrot.lane.b32.xlu1 %v2860_v34, %s2639_s6 }
0x2a7e   :  { %v1953_v3 = vpop.permute.xlu1 %1952 }
0x2a7f   :  { %v1955_v4 = vadd.f32 %v1953_v3, %v1945_v2 }
0x2a81   :  { %2476 = vtanh.f32 %v1955_v4  ;;  %1969 = vrot.lane.b32.xlu1 %v1955_v4, %s2639_s6 }
0x2a82   :  { %v1056_v7 = vpop.permute.xlu1 %1055 }
0x2a83   :  { %1058 = vst.msk [vmem:[#allocation14] sm:$0x3] %vm302_vm2, %v1056_v7 }
0x2a8e   :  { %v2477_v9 = vpop.eup %2476 }
0x2a8f   :  { %1958 = vrot.lane.b32.xlu0 %v2477_v9, %s2637_s29 }
0x2af3   :  { %v1970_v11 = vpop.permute.xlu1 %1969 }
0x2af4   :  { %1973 = vst.msk [vmem:[#allocation14 + $0x2] sm:$0x3] %vm302_vm2, %v1970_v11 }
0x2af5   :  { %2589 = shalt.err (!%p2586_p1)
}
0x2af6   :  { %s2641_s13 = smov 2   ;;  %s2642_s16 = smov [#allocation13]  }
0x2af7   :  { %1997 = dma.vmem_to_hbm [thread:$0]  %s1992_s11, 64, %s3018_s8, [#allocation15], %s2638_s3, %s2638_s3, %s2641_s13  }
0x2af8   :  { %s1979_s17 = sshll.u32 %s2642_s16, 4  ;;  %s1980_s17 = int_to_ptr.vmem [resolvable:$true] %s1979_s17 }
0x2af9   :  { %s2598_s18 = scalar_lea.vmem %s1980_s17, 64  ;;  %p2603_p3 = scmp.lt.s32.totalorder %s1980_s17, %s1980_s17 }
0x2afa   :  { %p2599_p2 = scmp.ne.s32.totalorder %s1980_s17, %s2598_s18  ;;  %p2604_p4 = scmp.lt.s32.totalorder %s2598_s18, %s2598_s18 }
0x2afc   :  { %p2605_p5 = por %p2604_p4, %p2603_p3 }
0x2afe   :  { %p2606_p6 = pnand %p2605_p5, %p2599_p2 }
0x2b01   :  { %v1959_v34 = vpop.permute.xlu0 %1958 }
0x2b02   :  { %v1961_v12 = vmul.f32 %v2475_v62, %v1959_v34 }
0x2b04   :  { %1963 = vrot.lane.b32.xlu0 %v1961_v12, %s2638_s3 }
0x2b76   :  { %v1964_v13 = vpop.permute.xlu0 %1963 }
0x2b77   :  { %1967 = vst.msk [vmem:[#allocation13 + $0x2] sm:$0x3] %vm302_vm2, %v1964_v13 }
0x2b78   :  { %2609 = shalt.err (!%p2606_p6)
}
0x2b79   :  { %1985 = dma.vmem_to_hbm [thread:$0]  %s1980_s17, 64, %s3017_s7, [#allocation6], %s2638_s3, %s2638_s3, %s2641_s13  }
0x2b7a   :  { %2624 = dma.done.wait [#allocation6], 64  }
0x2b7b   :  { %2625 = vsyncadd [#allocation6], 4294967232 }
0x2b7c   :  { %2626 = dma.done.wait [#allocation15], 64  }
0x2b7d   :  { %2627 = vsyncadd [#allocation15], 4294967232 }
0x2b7e   :  { %2004 = vsyncpa [#allocation5], 1 }
0x2b7f   :  { %2005 = vsyncpa [#allocation8], 1 }
0x2b80   :  { %2006 = vsyncpa [#allocation11], 1 }
0x2b81   :  { %2007 = vsyncpa [#allocation6], 1 }
0x2b82   :  { %2008 = vsyncpa [#allocation15], 1 }

</bundles_post_ra>
